<compile_context>
chip_gen: v7x
topology: tpu7x:2x2x1
jax: 0.10.0
libtpu: 0.0.40
codegen_flags: <defaults>
</compile_context>

<pallas_src>
import functools

import jax
import jax.numpy as jnp
from jax import lax
from jax.experimental import pallas as pl
from jax.experimental.pallas import tpu as pltpu

HIDDEN = 64
UNROLL = 8


def _rnn_chunk_kernel(t_chunk, use_bf16,
                      x_ref, wih0_ref, b0_ref, whh0_ref, wih1_ref, whh1_ref, b1_ref,
                      wm_ref, bm_ref,
                      out_ref,
                      h1_ref, h2_ref, h2_acc_ref):
    c = pl.program_id(1)   # time-chunk axis (grid = (batch_blocks, chunks))

    # torch.nn.RNN default h0 = 0; re-init at the first chunk of every batch block.
    @pl.when(c == 0)
    def _():
        h1_ref[...] = jnp.zeros_like(h1_ref)
        h2_ref[...] = jnp.zeros_like(h2_ref)

    cdt = jnp.bfloat16 if use_bf16 else jnp.float32

    # Weights: loaded once per chunk (constant index maps => DMA'd once), cast once.
    wih0 = wih0_ref[...].astype(cdt)   # (F, 64)    W_ih0^T
    whh0 = whh0_ref[...].astype(cdt)   # (64, 64)   W_hh0^T
    wih1 = wih1_ref[...].astype(cdt)   # (64, 64)   W_ih1^T
    whh1 = whh1_ref[...].astype(cdt)   # (64, 64)   W_hh1^T
    b0 = b0_ref[...]                   # (1, 64)    b_ih0 + b_hh0   (f32)
    b1 = b1_ref[...]                   # (1, 64)    b_ih1 + b_hh1   (f32)

    def step(t, carry):
        h1, h2 = carry
        # Off-critical-chain work (depends only on x_t / old h2): the scheduler can
        # overlap these with the previous step's recurrent dot+tanh (unroll=8).
        xw_t = jnp.dot(x_ref[t].astype(cdt), wih0,
                       preferred_element_type=jnp.float32) + b0
        p = jnp.dot(h2.astype(cdt), whh1,
                    preferred_element_type=jnp.float32) + b1
        # Serial critical chain: h1 -> dot -> tanh -> dot -> tanh.
        h1 = jnp.tanh(xw_t + jnp.dot(h1.astype(cdt), whh0,
                                     preferred_element_type=jnp.float32))
        h2 = jnp.tanh(jnp.dot(h1.astype(cdt), wih1,
                              preferred_element_type=jnp.float32) + p)
        h2_acc_ref[t] = h2
        return (h1, h2)

    h1, h2 = lax.fori_loop(0, t_chunk, step, (h1_ref[...], h2_ref[...]),
                           unroll=UNROLL)
    h1_ref[...] = h1
    h2_ref[...] = h2

    # MLP head + sigmoid once per chunk over the accumulated h2 states:
    # (T, Bt, 64) * (1, 64) -> lane-reduce -> (T, Bt). One store per chunk.
    y = jnp.sum(h2_acc_ref[...] * wm_ref[...], axis=-1) + bm_ref[...]
    out_ref[...] = jax.nn.sigmoid(y)


def _choose_t_chunk(S, b_block, vmem_budget_bytes):
    """~S/ceil(S/512) rounded up to the unroll multiple, capped by a VMEM budget."""
    sub = -(-b_block // 8) * 8
    # per timestep in VMEM (lane-padded to 128): 2x double-buffered x block + h2_acc scratch
    bytes_per_t = 4 * sub * 128 * 3
    cap = max(UNROLL, (vmem_budget_bytes // bytes_per_t) // UNROLL * UNROLL)
    n = -(-S // 512)                       # number of chunks at the ~512 target
    tc = -(-S // n)                        # balanced chunk length (no wasted tail steps)
    tc = -(-tc // UNROLL) * UNROLL         # multiple of the unroll factor
    return int(min(tc, cap))


def rnn_model_forward(x_ncl, params, *, t_chunk=None, use_bf16=True,
                      vmem_budget_bytes=32 << 20, vmem_limit_bytes=None):
    """x_ncl: (batch, n_features, seq_len) float32.  Returns (seq_len*batch,)."""
    B, F, S = x_ncl.shape
    (wih0_t, b0, whh0_t, wih1_t, whh1_t, b1, wm_row, bm) = params

    # Batch blocking: feeds v7x's second TensorCore for large B; nb=1 for small B.
    if B >= 16 and B % 2 == 0:
        nb, b_block = 2, B // 2
    else:
        nb, b_block = 1, B

    if t_chunk is None:
        t_chunk = _choose_t_chunk(S, b_block, vmem_budget_bytes)
    t_chunk = max(UNROLL, -(-t_chunk // UNROLL) * UNROLL)
    num_chunks = pl.cdiv(S, t_chunk)
    s_pad = num_chunks * t_chunk

    # (B, F, S) -> (S, B, F) == x.permute(2, 0, 1); pad tail timesteps (sliced off below).
    x_sbf = jnp.transpose(x_ncl, (2, 0, 1))
    if s_pad != S:
        x_sbf = jnp.pad(x_sbf, ((0, s_pad - S), (0, 0), (0, 0)))
    # Split batch into blocks: (nb, S_pad, b_block, F).
    x_blk = x_sbf.reshape(s_pad, nb, b_block, F).transpose(1, 0, 2, 3)

    if vmem_limit_bytes is None:
        # 48 MiB default: above the 32 MiB scoped default, below v7x's 64 MiB physical.
        vmem_limit_bytes = min(vmem_budget_bytes + (16 << 20), 48 << 20)

    kernel = functools.partial(_rnn_chunk_kernel, t_chunk, use_bf16)

    out = pl.pallas_call(
        kernel,
        out_shape=jax.ShapeDtypeStruct((nb, s_pad, b_block), jnp.float32),
        grid_spec=pltpu.PrefetchScalarGridSpec(
            num_scalar_prefetch=0,
            grid=(nb, num_chunks),
            in_specs=[
                pl.BlockSpec((None, t_chunk, b_block, F), lambda g, c: (g, c, 0, 0)),  # x chunk
                pl.BlockSpec((F, HIDDEN), lambda g, c: (0, 0)),        # W_ih0^T
                pl.BlockSpec((1, HIDDEN), lambda g, c: (0, 0)),        # b_ih0 + b_hh0
                pl.BlockSpec((HIDDEN, HIDDEN), lambda g, c: (0, 0)),   # W_hh0^T
                pl.BlockSpec((HIDDEN, HIDDEN), lambda g, c: (0, 0)),   # W_ih1^T
                pl.BlockSpec((HIDDEN, HIDDEN), lambda g, c: (0, 0)),   # W_hh1^T
                pl.BlockSpec((1, HIDDEN), lambda g, c: (0, 0)),        # b_ih1 + b_hh1
                pl.BlockSpec((1, HIDDEN), lambda g, c: (0, 0)),        # W_mlp row
                pl.BlockSpec((1, 1), lambda g, c: (0, 0)),             # b_mlp
            ],
            out_specs=pl.BlockSpec((None, t_chunk, b_block), lambda g, c: (g, c, 0)),
            scratch_shapes=[
                pltpu.VMEM((b_block, HIDDEN), jnp.float32),            # h1 carry (across chunks)
                pltpu.VMEM((b_block, HIDDEN), jnp.float32),            # h2 carry (across chunks)
                pltpu.VMEM((t_chunk, b_block, HIDDEN), jnp.float32),   # per-chunk h2 accumulator
            ],
        ),
        compiler_params=pltpu.CompilerParams(
            dimension_semantics=("parallel", "arbitrary"),  # batch-parallel, recurrent over time
            vmem_limit_bytes=vmem_limit_bytes,
        ),
    )(x_blk, wih0_t, b0, whh0_t, wih1_t, whh1_t, b1, wm_row, bm)

    # (nb, S_pad, b_block) -> (S, B), seq-major then batch (== torch .view(-1) order).
    out = out.transpose(1, 0, 2).reshape(s_pad, B)[:S]
    return out.reshape(-1)


def make_params(key, n_features):
    """Init matching torch.nn.RNN/Linear uniform(-1/sqrt(fan), 1/sqrt(fan)) shapes."""
    ks = jax.random.split(key, 10)
    bound = 1.0 / jnp.sqrt(jnp.float32(HIDDEN))
    u = lambda k, shape, b: jax.random.uniform(k, shape, jnp.float32, -b, b)

    w_ih0 = u(ks[0], (HIDDEN, n_features), bound)
    w_hh0 = u(ks[1], (HIDDEN, HIDDEN), bound)
    b_ih0 = u(ks[2], (HIDDEN,), bound)
    b_hh0 = u(ks[3], (HIDDEN,), bound)
    w_ih1 = u(ks[4], (HIDDEN, HIDDEN), bound)
    w_hh1 = u(ks[5], (HIDDEN, HIDDEN), bound)
    b_ih1 = u(ks[6], (HIDDEN,), bound)
    b_hh1 = u(ks[7], (HIDDEN,), bound)
    w_mlp = u(ks[8], (1, HIDDEN), bound)
    b_mlp = u(ks[9], (1,), bound)

    # Pre-transpose / pre-fuse biases for the kernel (glue, stays in plain JAX).
    params = (
        w_ih0.T,                             # (F, 64)
        (b_ih0 + b_hh0).reshape(1, HIDDEN),  # (1, 64)
        w_hh0.T,                             # (64, 64)
        w_ih1.T,                             # (64, 64)
        w_hh1.T,                             # (64, 64)
        (b_ih1 + b_hh1).reshape(1, HIDDEN),  # (1, 64)
        w_mlp,                               # (1, 64)
        b_mlp.reshape(1, 1),                 # (1, 1)
    )
    raw = (w_ih0, w_hh0, b_ih0, b_hh0, w_ih1, w_hh1, b_ih1, b_hh1, w_mlp, b_mlp)
    return params, raw


def reference_forward(x_ncl, raw_params):
    """Pure-JAX reference mirroring the PyTorch module."""
    (w_ih0, w_hh0, b_ih0, b_hh0, w_ih1, w_hh1, b_ih1, b_hh1, w_mlp, b_mlp) = raw_params
    x = jnp.transpose(x_ncl, (2, 0, 1))  # (S, B, F)
    B = x.shape[1]

    def step(carry, x_t):
        h1, h2 = carry
        h1 = jnp.tanh(x_t @ w_ih0.T + b_ih0 + h1 @ w_hh0.T + b_hh0)
        h2 = jnp.tanh(h1 @ w_ih1.T + b_ih1 + h2 @ w_hh1.T + b_hh1)
        return (h1, h2), h2

    h0 = (jnp.zeros((B, HIDDEN), jnp.float32), jnp.zeros((B, HIDDEN), jnp.float32))
    _, outs = jax.lax.scan(step, h0, x)            # (S, B, 64)
    flat = outs.reshape(-1, HIDDEN)                # (S*B, 64)
    y = jax.nn.sigmoid(flat @ w_mlp.T + b_mlp)     # (S*B, 1)
    return y.reshape(-1)


if __name__ == "__main__":
    key = jax.random.PRNGKey(0)
    n_features, batch, seq_len = 16, 4, 8
    k_x, k_p = jax.random.split(key)
    x = jax.random.normal(k_x, (batch, n_features, seq_len), jnp.float32)

    params, raw_params = make_params(k_p, n_features)
    ref = reference_forward(x, raw_params)

    # Exact-path check (f32 MXU inputs) — validates the restructured recurrence tightly.
    out_f32 = jax.block_until_ready(rnn_model_forward(x, params, use_bf16=False))
    assert out_f32.shape == (seq_len * batch,)
    assert jnp.allclose(out_f32, ref, atol=2e-5, rtol=1e-5), (out_f32, ref)

    # Fast path (bf16 MXU inputs, f32 accumulation/state) — looser tolerance.
    out = jax.block_until_ready(rnn_model_forward(x, params, use_bf16=True))
    assert out.shape == (seq_len * batch,)
    assert jnp.allclose(out, ref, atol=3e-2), (out, ref)

    print("KERNEL_OK")
</pallas_src>

<mosaic_0001>
module attributes {stable_mosaic.version = 11 : i64} {
  func.func @_rnn_chunk_kernel(%arg0: i32, %arg1: i32, %arg2: memref<1x8x4x16xf32, #tpu.memory_space<vmem>>, %arg3: memref<16x64xf32, #tpu.memory_space<vmem>>, %arg4: memref<1x64xf32, #tpu.memory_space<vmem>>, %arg5: memref<64x64xf32, #tpu.memory_space<vmem>>, %arg6: memref<64x64xf32, #tpu.memory_space<vmem>>, %arg7: memref<64x64xf32, #tpu.memory_space<vmem>>, %arg8: memref<1x64xf32, #tpu.memory_space<vmem>>, %arg9: memref<1x64xf32, #tpu.memory_space<vmem>>, %arg10: memref<1x1xf32, #tpu.memory_space<vmem>>, %arg11: memref<1x8x4xf32, #tpu.memory_space<vmem>>, %arg12: memref<4x64xf32, #tpu.memory_space<vmem>>, %arg13: memref<4x64xf32, #tpu.memory_space<vmem>>, %arg14: memref<8x4x64xf32, #tpu.memory_space<vmem>>) attributes {dimension_semantics = [#tpu.dimension_semantics<parallel>, #tpu.dimension_semantics<arbitrary>], iteration_bounds = array<i64: 1, 1>, scalar_prefetch = 0 : i64, scratch_operands = 3 : i64, tpu.core_type = #tpu.core_type<tc>, window_params = [{transform_indices = @transform_0, window_bounds = array<i64: 1, 8, 4, 16>}, {pipeline_mode = #tpu.pipeline_mode<synchronous>, transform_indices = @transform_1, window_bounds = array<i64: 16, 64>}, {pipeline_mode = #tpu.pipeline_mode<synchronous>, transform_indices = @transform_2, window_bounds = array<i64: 1, 64>}, {pipeline_mode = #tpu.pipeline_mode<synchronous>, transform_indices = @transform_3, window_bounds = array<i64: 64, 64>}, {pipeline_mode = #tpu.pipeline_mode<synchronous>, transform_indices = @transform_4, window_bounds = array<i64: 64, 64>}, {pipeline_mode = #tpu.pipeline_mode<synchronous>, transform_indices = @transform_5, window_bounds = array<i64: 64, 64>}, {pipeline_mode = #tpu.pipeline_mode<synchronous>, transform_indices = @transform_6, window_bounds = array<i64: 1, 64>}, {pipeline_mode = #tpu.pipeline_mode<synchronous>, transform_indices = @transform_7, window_bounds = array<i64: 1, 64>}, {pipeline_mode = #tpu.pipeline_mode<synchronous>, transform_indices = @transform_8, window_bounds = array<i64: 1, 1>}, {transform_indices = @transform_9, window_bounds = array<i64: 1, 8, 4>}]} {
    %c0_i32 = arith.constant 0 : i32
    %0 = arith.cmpi eq, %arg1, %c0_i32 : i32
    %1 = arith.extui %0 : i1 to i32
    %c0_i32_0 = arith.constant 0 : i32
    %2 = arith.cmpi ne, %1, %c0_i32_0 : i32
    scf.if %2 {
      %cst_104 = arith.constant 0.000000e+00 : f32
      %182 = vector.broadcast %cst_104 : f32 to vector<4x64xf32>
      %c0_105 = arith.constant 0 : index
      %c0_106 = arith.constant 0 : index
      %183 = vector.load %arg12[%c0_105, %c0_106] : memref<4x64xf32, #tpu.memory_space<vmem>>, vector<4x64xf32>
      tpu.vector_store %arg12[%c0_105, %c0_106], %182 {strides = array<i32>} : memref<4x64xf32, #tpu.memory_space<vmem>>, vector<4x64xf32>,
      %cst_107 = arith.constant 0.000000e+00 : f32
      %184 = vector.broadcast %cst_107 : f32 to vector<4x64xf32>
      %c0_108 = arith.constant 0 : index
      %c0_109 = arith.constant 0 : index
      %185 = vector.load %arg13[%c0_108, %c0_109] : memref<4x64xf32, #tpu.memory_space<vmem>>, vector<4x64xf32>
      tpu.vector_store %arg13[%c0_108, %c0_109], %184 {strides = array<i32>} : memref<4x64xf32, #tpu.memory_space<vmem>>, vector<4x64xf32>,
    } else {
    }
    %c0 = arith.constant 0 : index
    %c0_1 = arith.constant 0 : index
    %3 = vector.load %arg3[%c0, %c0_1] : memref<16x64xf32, #tpu.memory_space<vmem>>, vector<16x64xf32>
    %c0_2 = arith.constant 0 : index
    %c0_3 = arith.constant 0 : index
    %4 = vector.load %arg5[%c0_2, %c0_3] : memref<64x64xf32, #tpu.memory_space<vmem>>, vector<64x64xf32>
    %c0_4 = arith.constant 0 : index
    %c0_5 = arith.constant 0 : index
    %5 = vector.load %arg6[%c0_4, %c0_5] : memref<64x64xf32, #tpu.memory_space<vmem>>, vector<64x64xf32>
    %c0_6 = arith.constant 0 : index
    %c0_7 = arith.constant 0 : index
    %6 = vector.load %arg7[%c0_6, %c0_7] : memref<64x64xf32, #tpu.memory_space<vmem>>, vector<64x64xf32>
    %c0_8 = arith.constant 0 : index
    %c0_9 = arith.constant 0 : index
    %7 = vector.load %arg4[%c0_8, %c0_9] : memref<1x64xf32, #tpu.memory_space<vmem>>, vector<1x64xf32>
    %c0_10 = arith.constant 0 : index
    %c0_11 = arith.constant 0 : index
    %8 = vector.load %arg8[%c0_10, %c0_11] : memref<1x64xf32, #tpu.memory_space<vmem>>, vector<1x64xf32>
    %c0_12 = arith.constant 0 : index
    %c0_13 = arith.constant 0 : index
    %9 = vector.load %arg12[%c0_12, %c0_13] : memref<4x64xf32, #tpu.memory_space<vmem>>, vector<4x64xf32>
    %c0_14 = arith.constant 0 : index
    %c0_15 = arith.constant 0 : index
    %10 = vector.load %arg13[%c0_14, %c0_15] : memref<4x64xf32, #tpu.memory_space<vmem>>, vector<4x64xf32>
    %c0_i32_16 = arith.constant 0 : i32
    %c0_17 = arith.constant 0 : index
    %11 = arith.index_cast %c0_i32_16 : i32 to index
    %c0_18 = arith.constant 0 : index
    %c0_19 = arith.constant 0 : index
    %12 = vector.load %arg2[%c0_17, %11, %c0_18, %c0_19] : memref<1x8x4x16xf32, #tpu.memory_space<vmem>>, vector<1x1x4x16xf32>
    %13 = vector.shape_cast %12 : vector<1x1x4x16xf32> to vector<4x16xf32>
    %cst = arith.constant dense<0.000000e+00> : vector<4x64xf32>
    %14 = tpu.matmul %13, %3, %cst {dimension_numbers = #tpu.dot_dimension_numbers<[1], [0], [0], [1], [0, 0, 1, 1], [], []>} : vector<4x16xf32>, vector<16x64xf32>, vector<4x64xf32> -> vector<4x64xf32>
    %15 = vector.broadcast %7 : vector<1x64xf32> to vector<4x64xf32>
    %16 = arith.addf %14, %15 : vector<4x64xf32>
    %cst_20 = arith.constant dense<0.000000e+00> : vector<4x64xf32>
    %17 = tpu.matmul %10, %6, %cst_20 {dimension_numbers = #tpu.dot_dimension_numbers<[1], [0], [0], [1], [0, 0, 1, 1], [], []>} : vector<4x64xf32>, vector<64x64xf32>, vector<4x64xf32> -> vector<4x64xf32>
    %18 = vector.broadcast %8 : vector<1x64xf32> to vector<4x64xf32>
    %19 = arith.addf %17, %18 : vector<4x64xf32>
    %cst_21 = arith.constant dense<0.000000e+00> : vector<4x64xf32>
    %20 = tpu.matmul %9, %4, %cst_21 {dimension_numbers = #tpu.dot_dimension_numbers<[1], [0], [0], [1], [0, 0, 1, 1], [], []>} : vector<4x64xf32>, vector<64x64xf32>, vector<4x64xf32> -> vector<4x64xf32>
    %21 = arith.addf %16, %20 : vector<4x64xf32>
    %22 = math.tanh %21 : vector<4x64xf32>
    %cst_22 = arith.constant dense<0.000000e+00> : vector<4x64xf32>
    %23 = tpu.matmul %22, %5, %cst_22 {dimension_numbers = #tpu.dot_dimension_numbers<[1], [0], [0], [1], [0, 0, 1, 1], [], []>} : vector<4x64xf32>, vector<64x64xf32>, vector<4x64xf32> -> vector<4x64xf32>
    %24 = arith.addf %23, %19 : vector<4x64xf32>
    %25 = math.tanh %24 : vector<4x64xf32>
    %26 = arith.index_cast %c0_i32_16 : i32 to index
    %c0_23 = arith.constant 0 : index
    %c0_24 = arith.constant 0 : index
    %27 = vector.load %arg14[%26, %c0_23, %c0_24] : memref<8x4x64xf32, #tpu.memory_space<vmem>>, vector<1x4x64xf32>
    %28 = vector.shape_cast %27 : vector<1x4x64xf32> to vector<4x64xf32>
    %29 = vector.shape_cast %25 : vector<4x64xf32> to vector<1x4x64xf32>
    tpu.vector_store %arg14[%26, %c0_23, %c0_24], %29 {strides = array<i32>} : memref<8x4x64xf32, #tpu.memory_space<vmem>>, vector<1x4x64xf32>,
    %c1_i32 = arith.constant 1 : i32
    %c0_25 = arith.constant 0 : index
    %30 = arith.index_cast %c1_i32 : i32 to index
    %c0_26 = arith.constant 0 : index
    %c0_27 = arith.constant 0 : index
    %31 = vector.load %arg2[%c0_25, %30, %c0_26, %c0_27] : memref<1x8x4x16xf32, #tpu.memory_space<vmem>>, vector<1x1x4x16xf32>
    %32 = vector.shape_cast %31 : vector<1x1x4x16xf32> to vector<4x16xf32>
    %cst_28 = arith.constant dense<0.000000e+00> : vector<4x64xf32>
    %33 = tpu.matmul %32, %3, %cst_28 {dimension_numbers = #tpu.dot_dimension_numbers<[1], [0], [0], [1], [0, 0, 1, 1], [], []>} : vector<4x16xf32>, vector<16x64xf32>, vector<4x64xf32> -> vector<4x64xf32>
    %34 = vector.broadcast %7 : vector<1x64xf32> to vector<4x64xf32>
    %35 = arith.addf %33, %34 : vector<4x64xf32>
    %cst_29 = arith.constant dense<0.000000e+00> : vector<4x64xf32>
    %36 = tpu.matmul %25, %6, %cst_29 {dimension_numbers = #tpu.dot_dimension_numbers<[1], [0], [0], [1], [0, 0, 1, 1], [], []>} : vector<4x64xf32>, vector<64x64xf32>, vector<4x64xf32> -> vector<4x64xf32>
    %37 = vector.broadcast %8 : vector<1x64xf32> to vector<4x64xf32>
    %38 = arith.addf %36, %37 : vector<4x64xf32>
    %cst_30 = arith.constant dense<0.000000e+00> : vector<4x64xf32>
    %39 = tpu.matmul %22, %4, %cst_30 {dimension_numbers = #tpu.dot_dimension_numbers<[1], [0], [0], [1], [0, 0, 1, 1], [], []>} : vector<4x64xf32>, vector<64x64xf32>, vector<4x64xf32> -> vector<4x64xf32>
    %40 = arith.addf %35, %39 : vector<4x64xf32>
    %41 = math.tanh %40 : vector<4x64xf32>
    %cst_31 = arith.constant dense<0.000000e+00> : vector<4x64xf32>
    %42 = tpu.matmul %41, %5, %cst_31 {dimension_numbers = #tpu.dot_dimension_numbers<[1], [0], [0], [1], [0, 0, 1, 1], [], []>} : vector<4x64xf32>, vector<64x64xf32>, vector<4x64xf32> -> vector<4x64xf32>
    %43 = arith.addf %42, %38 : vector<4x64xf32>
    %44 = math.tanh %43 : vector<4x64xf32>
    %45 = arith.index_cast %c1_i32 : i32 to index
    %c0_32 = arith.constant 0 : index
    %c0_33 = arith.constant 0 : index
    %46 = vector.load %arg14[%45, %c0_32, %c0_33] : memref<8x4x64xf32, #tpu.memory_space<vmem>>, vector<1x4x64xf32>
    %47 = vector.shape_cast %46 : vector<1x4x64xf32> to vector<4x64xf32>
    %48 = vector.shape_cast %44 : vector<4x64xf32> to vector<1x4x64xf32>
    tpu.vector_store %arg14[%45, %c0_32, %c0_33], %48 {strides = array<i32>} : memref<8x4x64xf32, #tpu.memory_space<vmem>>, vector<1x4x64xf32>,
    %c2_i32 = arith.constant 2 : i32
    %c0_34 = arith.constant 0 : index
    %49 = arith.index_cast %c2_i32 : i32 to index
    %c0_35 = arith.constant 0 : index
    %c0_36 = arith.constant 0 : index
    %50 = vector.load %arg2[%c0_34, %49, %c0_35, %c0_36] : memref<1x8x4x16xf32, #tpu.memory_space<vmem>>, vector<1x1x4x16xf32>
    %51 = vector.shape_cast %50 : vector<1x1x4x16xf32> to vector<4x16xf32>
    %cst_37 = arith.constant dense<0.000000e+00> : vector<4x64xf32>
    %52 = tpu.matmul %51, %3, %cst_37 {dimension_numbers = #tpu.dot_dimension_numbers<[1], [0], [0], [1], [0, 0, 1, 1], [], []>} : vector<4x16xf32>, vector<16x64xf32>, vector<4x64xf32> -> vector<4x64xf32>
    %53 = vector.broadcast %7 : vector<1x64xf32> to vector<4x64xf32>
    %54 = arith.addf %52, %53 : vector<4x64xf32>
    %cst_38 = arith.constant dense<0.000000e+00> : vector<4x64xf32>
    %55 = tpu.matmul %44, %6, %cst_38 {dimension_numbers = #tpu.dot_dimension_numbers<[1], [0], [0], [1], [0, 0, 1, 1], [], []>} : vector<4x64xf32>, vector<64x64xf32>, vector<4x64xf32> -> vector<4x64xf32>
    %56 = vector.broadcast %8 : vector<1x64xf32> to vector<4x64xf32>
    %57 = arith.addf %55, %56 : vector<4x64xf32>
    %cst_39 = arith.constant dense<0.000000e+00> : vector<4x64xf32>
    %58 = tpu.matmul %41, %4, %cst_39 {dimension_numbers = #tpu.dot_dimension_numbers<[1], [0], [0], [1], [0, 0, 1, 1], [], []>} : vector<4x64xf32>, vector<64x64xf32>, vector<4x64xf32> -> vector<4x64xf32>
    %59 = arith.addf %54, %58 : vector<4x64xf32>
    %60 = math.tanh %59 : vector<4x64xf32>
    %cst_40 = arith.constant dense<0.000000e+00> : vector<4x64xf32>
    %61 = tpu.matmul %60, %5, %cst_40 {dimension_numbers = #tpu.dot_dimension_numbers<[1], [0], [0], [1], [0, 0, 1, 1], [], []>} : vector<4x64xf32>, vector<64x64xf32>, vector<4x64xf32> -> vector<4x64xf32>
    %62 = arith.addf %61, %57 : vector<4x64xf32>
    %63 = math.tanh %62 : vector<4x64xf32>
    %64 = arith.index_cast %c2_i32 : i32 to index
    %c0_41 = arith.constant 0 : index
    %c0_42 = arith.constant 0 : index
    %65 = vector.load %arg14[%64, %c0_41, %c0_42] : memref<8x4x64xf32, #tpu.memory_space<vmem>>, vector<1x4x64xf32>
    %66 = vector.shape_cast %65 : vector<1x4x64xf32> to vector<4x64xf32>
    %67 = vector.shape_cast %63 : vector<4x64xf32> to vector<1x4x64xf32>
    tpu.vector_store %arg14[%64, %c0_41, %c0_42], %67 {strides = array<i32>} : memref<8x4x64xf32, #tpu.memory_space<vmem>>, vector<1x4x64xf32>,
    %c3_i32 = arith.constant 3 : i32
    %c0_43 = arith.constant 0 : index
    %68 = arith.index_cast %c3_i32 : i32 to index
    %c0_44 = arith.constant 0 : index
    %c0_45 = arith.constant 0 : index
    %69 = vector.load %arg2[%c0_43, %68, %c0_44, %c0_45] : memref<1x8x4x16xf32, #tpu.memory_space<vmem>>, vector<1x1x4x16xf32>
    %70 = vector.shape_cast %69 : vector<1x1x4x16xf32> to vector<4x16xf32>
    %cst_46 = arith.constant dense<0.000000e+00> : vector<4x64xf32>
    %71 = tpu.matmul %70, %3, %cst_46 {dimension_numbers = #tpu.dot_dimension_numbers<[1], [0], [0], [1], [0, 0, 1, 1], [], []>} : vector<4x16xf32>, vector<16x64xf32>, vector<4x64xf32> -> vector<4x64xf32>
    %72 = vector.broadcast %7 : vector<1x64xf32> to vector<4x64xf32>
    %73 = arith.addf %71, %72 : vector<4x64xf32>
    %cst_47 = arith.constant dense<0.000000e+00> : vector<4x64xf32>
    %74 = tpu.matmul %63, %6, %cst_47 {dimension_numbers = #tpu.dot_dimension_numbers<[1], [0], [0], [1], [0, 0, 1, 1], [], []>} : vector<4x64xf32>, vector<64x64xf32>, vector<4x64xf32> -> vector<4x64xf32>
    %75 = vector.broadcast %8 : vector<1x64xf32> to vector<4x64xf32>
    %76 = arith.addf %74, %75 : vector<4x64xf32>
    %cst_48 = arith.constant dense<0.000000e+00> : vector<4x64xf32>
    %77 = tpu.matmul %60, %4, %cst_48 {dimension_numbers = #tpu.dot_dimension_numbers<[1], [0], [0], [1], [0, 0, 1, 1], [], []>} : vector<4x64xf32>, vector<64x64xf32>, vector<4x64xf32> -> vector<4x64xf32>
    %78 = arith.addf %73, %77 : vector<4x64xf32>
    %79 = math.tanh %78 : vector<4x64xf32>
    %cst_49 = arith.constant dense<0.000000e+00> : vector<4x64xf32>
    %80 = tpu.matmul %79, %5, %cst_49 {dimension_numbers = #tpu.dot_dimension_numbers<[1], [0], [0], [1], [0, 0, 1, 1], [], []>} : vector<4x64xf32>, vector<64x64xf32>, vector<4x64xf32> -> vector<4x64xf32>
    %81 = arith.addf %80, %76 : vector<4x64xf32>
    %82 = math.tanh %81 : vector<4x64xf32>
    %83 = arith.index_cast %c3_i32 : i32 to index
    %c0_50 = arith.constant 0 : index
    %c0_51 = arith.constant 0 : index
    %84 = vector.load %arg14[%83, %c0_50, %c0_51] : memref<8x4x64xf32, #tpu.memory_space<vmem>>, vector<1x4x64xf32>
    %85 = vector.shape_cast %84 : vector<1x4x64xf32> to vector<4x64xf32>
    %86 = vector.shape_cast %82 : vector<4x64xf32> to vector<1x4x64xf32>
    tpu.vector_store %arg14[%83, %c0_50, %c0_51], %86 {strides = array<i32>} : memref<8x4x64xf32, #tpu.memory_space<vmem>>, vector<1x4x64xf32>,
    %c4_i32 = arith.constant 4 : i32
    %c0_52 = arith.constant 0 : index
    %87 = arith.index_cast %c4_i32 : i32 to index
    %c0_53 = arith.constant 0 : index
    %c0_54 = arith.constant 0 : index
    %88 = vector.load %arg2[%c0_52, %87, %c0_53, %c0_54] : memref<1x8x4x16xf32, #tpu.memory_space<vmem>>, vector<1x1x4x16xf32>
    %89 = vector.shape_cast %88 : vector<1x1x4x16xf32> to vector<4x16xf32>
    %cst_55 = arith.constant dense<0.000000e+00> : vector<4x64xf32>
    %90 = tpu.matmul %89, %3, %cst_55 {dimension_numbers = #tpu.dot_dimension_numbers<[1], [0], [0], [1], [0, 0, 1, 1], [], []>} : vector<4x16xf32>, vector<16x64xf32>, vector<4x64xf32> -> vector<4x64xf32>
    %91 = vector.broadcast %7 : vector<1x64xf32> to vector<4x64xf32>
    %92 = arith.addf %90, %91 : vector<4x64xf32>
    %cst_56 = arith.constant dense<0.000000e+00> : vector<4x64xf32>
    %93 = tpu.matmul %82, %6, %cst_56 {dimension_numbers = #tpu.dot_dimension_numbers<[1], [0], [0], [1], [0, 0, 1, 1], [], []>} : vector<4x64xf32>, vector<64x64xf32>, vector<4x64xf32> -> vector<4x64xf32>
    %94 = vector.broadcast %8 : vector<1x64xf32> to vector<4x64xf32>
    %95 = arith.addf %93, %94 : vector<4x64xf32>
    %cst_57 = arith.constant dense<0.000000e+00> : vector<4x64xf32>
    %96 = tpu.matmul %79, %4, %cst_57 {dimension_numbers = #tpu.dot_dimension_numbers<[1], [0], [0], [1], [0, 0, 1, 1], [], []>} : vector<4x64xf32>, vector<64x64xf32>, vector<4x64xf32> -> vector<4x64xf32>
    %97 = arith.addf %92, %96 : vector<4x64xf32>
    %98 = math.tanh %97 : vector<4x64xf32>
    %cst_58 = arith.constant dense<0.000000e+00> : vector<4x64xf32>
    %99 = tpu.matmul %98, %5, %cst_58 {dimension_numbers = #tpu.dot_dimension_numbers<[1], [0], [0], [1], [0, 0, 1, 1], [], []>} : vector<4x64xf32>, vector<64x64xf32>, vector<4x64xf32> -> vector<4x64xf32>
    %100 = arith.addf %99, %95 : vector<4x64xf32>
    %101 = math.tanh %100 : vector<4x64xf32>
    %102 = arith.index_cast %c4_i32 : i32 to index
    %c0_59 = arith.constant 0 : index
    %c0_60 = arith.constant 0 : index
    %103 = vector.load %arg14[%102, %c0_59, %c0_60] : memref<8x4x64xf32, #tpu.memory_space<vmem>>, vector<1x4x64xf32>
    %104 = vector.shape_cast %103 : vector<1x4x64xf32> to vector<4x64xf32>
    %105 = vector.shape_cast %101 : vector<4x64xf32> to vector<1x4x64xf32>
    tpu.vector_store %arg14[%102, %c0_59, %c0_60], %105 {strides = array<i32>} : memref<8x4x64xf32, #tpu.memory_space<vmem>>, vector<1x4x64xf32>,
    %c5_i32 = arith.constant 5 : i32
    %c0_61 = arith.constant 0 : index
    %106 = arith.index_cast %c5_i32 : i32 to index
    %c0_62 = arith.constant 0 : index
    %c0_63 = arith.constant 0 : index
    %107 = vector.load %arg2[%c0_61, %106, %c0_62, %c0_63] : memref<1x8x4x16xf32, #tpu.memory_space<vmem>>, vector<1x1x4x16xf32>
    %108 = vector.shape_cast %107 : vector<1x1x4x16xf32> to vector<4x16xf32>
    %cst_64 = arith.constant dense<0.000000e+00> : vector<4x64xf32>
    %109 = tpu.matmul %108, %3, %cst_64 {dimension_numbers = #tpu.dot_dimension_numbers<[1], [0], [0], [1], [0, 0, 1, 1], [], []>} : vector<4x16xf32>, vector<16x64xf32>, vector<4x64xf32> -> vector<4x64xf32>
    %110 = vector.broadcast %7 : vector<1x64xf32> to vector<4x64xf32>
    %111 = arith.addf %109, %110 : vector<4x64xf32>
    %cst_65 = arith.constant dense<0.000000e+00> : vector<4x64xf32>
    %112 = tpu.matmul %101, %6, %cst_65 {dimension_numbers = #tpu.dot_dimension_numbers<[1], [0], [0], [1], [0, 0, 1, 1], [], []>} : vector<4x64xf32>, vector<64x64xf32>, vector<4x64xf32> -> vector<4x64xf32>
    %113 = vector.broadcast %8 : vector<1x64xf32> to vector<4x64xf32>
    %114 = arith.addf %112, %113 : vector<4x64xf32>
    %cst_66 = arith.constant dense<0.000000e+00> : vector<4x64xf32>
    %115 = tpu.matmul %98, %4, %cst_66 {dimension_numbers = #tpu.dot_dimension_numbers<[1], [0], [0], [1], [0, 0, 1, 1], [], []>} : vector<4x64xf32>, vector<64x64xf32>, vector<4x64xf32> -> vector<4x64xf32>
    %116 = arith.addf %111, %115 : vector<4x64xf32>
    %117 = math.tanh %116 : vector<4x64xf32>
    %cst_67 = arith.constant dense<0.000000e+00> : vector<4x64xf32>
    %118 = tpu.matmul %117, %5, %cst_67 {dimension_numbers = #tpu.dot_dimension_numbers<[1], [0], [0], [1], [0, 0, 1, 1], [], []>} : vector<4x64xf32>, vector<64x64xf32>, vector<4x64xf32> -> vector<4x64xf32>
    %119 = arith.addf %118, %114 : vector<4x64xf32>
    %120 = math.tanh %119 : vector<4x64xf32>
    %121 = arith.index_cast %c5_i32 : i32 to index
    %c0_68 = arith.constant 0 : index
    %c0_69 = arith.constant 0 : index
    %122 = vector.load %arg14[%121, %c0_68, %c0_69] : memref<8x4x64xf32, #tpu.memory_space<vmem>>, vector<1x4x64xf32>
    %123 = vector.shape_cast %122 : vector<1x4x64xf32> to vector<4x64xf32>
    %124 = vector.shape_cast %120 : vector<4x64xf32> to vector<1x4x64xf32>
    tpu.vector_store %arg14[%121, %c0_68, %c0_69], %124 {strides = array<i32>} : memref<8x4x64xf32, #tpu.memory_space<vmem>>, vector<1x4x64xf32>,
    %c6_i32 = arith.constant 6 : i32
    %c0_70 = arith.constant 0 : index
    %125 = arith.index_cast %c6_i32 : i32 to index
    %c0_71 = arith.constant 0 : index
    %c0_72 = arith.constant 0 : index
    %126 = vector.load %arg2[%c0_70, %125, %c0_71, %c0_72] : memref<1x8x4x16xf32, #tpu.memory_space<vmem>>, vector<1x1x4x16xf32>
    %127 = vector.shape_cast %126 : vector<1x1x4x16xf32> to vector<4x16xf32>
    %cst_73 = arith.constant dense<0.000000e+00> : vector<4x64xf32>
    %128 = tpu.matmul %127, %3, %cst_73 {dimension_numbers = #tpu.dot_dimension_numbers<[1], [0], [0], [1], [0, 0, 1, 1], [], []>} : vector<4x16xf32>, vector<16x64xf32>, vector<4x64xf32> -> vector<4x64xf32>
    %129 = vector.broadcast %7 : vector<1x64xf32> to vector<4x64xf32>
    %130 = arith.addf %128, %129 : vector<4x64xf32>
    %cst_74 = arith.constant dense<0.000000e+00> : vector<4x64xf32>
    %131 = tpu.matmul %120, %6, %cst_74 {dimension_numbers = #tpu.dot_dimension_numbers<[1], [0], [0], [1], [0, 0, 1, 1], [], []>} : vector<4x64xf32>, vector<64x64xf32>, vector<4x64xf32> -> vector<4x64xf32>
    %132 = vector.broadcast %8 : vector<1x64xf32> to vector<4x64xf32>
    %133 = arith.addf %131, %132 : vector<4x64xf32>
    %cst_75 = arith.constant dense<0.000000e+00> : vector<4x64xf32>
    %134 = tpu.matmul %117, %4, %cst_75 {dimension_numbers = #tpu.dot_dimension_numbers<[1], [0], [0], [1], [0, 0, 1, 1], [], []>} : vector<4x64xf32>, vector<64x64xf32>, vector<4x64xf32> -> vector<4x64xf32>
    %135 = arith.addf %130, %134 : vector<4x64xf32>
    %136 = math.tanh %135 : vector<4x64xf32>
    %cst_76 = arith.constant dense<0.000000e+00> : vector<4x64xf32>
    %137 = tpu.matmul %136, %5, %cst_76 {dimension_numbers = #tpu.dot_dimension_numbers<[1], [0], [0], [1], [0, 0, 1, 1], [], []>} : vector<4x64xf32>, vector<64x64xf32>, vector<4x64xf32> -> vector<4x64xf32>
    %138 = arith.addf %137, %133 : vector<4x64xf32>
    %139 = math.tanh %138 : vector<4x64xf32>
    %140 = arith.index_cast %c6_i32 : i32 to index
    %c0_77 = arith.constant 0 : index
    %c0_78 = arith.constant 0 : index
    %141 = vector.load %arg14[%140, %c0_77, %c0_78] : memref<8x4x64xf32, #tpu.memory_space<vmem>>, vector<1x4x64xf32>
    %142 = vector.shape_cast %141 : vector<1x4x64xf32> to vector<4x64xf32>
    %143 = vector.shape_cast %139 : vector<4x64xf32> to vector<1x4x64xf32>
    tpu.vector_store %arg14[%140, %c0_77, %c0_78], %143 {strides = array<i32>} : memref<8x4x64xf32, #tpu.memory_space<vmem>>, vector<1x4x64xf32>,
    %c7_i32 = arith.constant 7 : i32
    %c0_79 = arith.constant 0 : index
    %144 = arith.index_cast %c7_i32 : i32 to index
    %c0_80 = arith.constant 0 : index
    %c0_81 = arith.constant 0 : index
    %145 = vector.load %arg2[%c0_79, %144, %c0_80, %c0_81] : memref<1x8x4x16xf32, #tpu.memory_space<vmem>>, vector<1x1x4x16xf32>
    %146 = vector.shape_cast %145 : vector<1x1x4x16xf32> to vector<4x16xf32>
    %cst_82 = arith.constant dense<0.000000e+00> : vector<4x64xf32>
    %147 = tpu.matmul %146, %3, %cst_82 {dimension_numbers = #tpu.dot_dimension_numbers<[1], [0], [0], [1], [0, 0, 1, 1], [], []>} : vector<4x16xf32>, vector<16x64xf32>, vector<4x64xf32> -> vector<4x64xf32>
    %148 = vector.broadcast %7 : vector<1x64xf32> to vector<4x64xf32>
    %149 = arith.addf %147, %148 : vector<4x64xf32>
    %cst_83 = arith.constant dense<0.000000e+00> : vector<4x64xf32>
    %150 = tpu.matmul %139, %6, %cst_83 {dimension_numbers = #tpu.dot_dimension_numbers<[1], [0], [0], [1], [0, 0, 1, 1], [], []>} : vector<4x64xf32>, vector<64x64xf32>, vector<4x64xf32> -> vector<4x64xf32>
    %151 = vector.broadcast %8 : vector<1x64xf32> to vector<4x64xf32>
    %152 = arith.addf %150, %151 : vector<4x64xf32>
    %cst_84 = arith.constant dense<0.000000e+00> : vector<4x64xf32>
    %153 = tpu.matmul %136, %4, %cst_84 {dimension_numbers = #tpu.dot_dimension_numbers<[1], [0], [0], [1], [0, 0, 1, 1], [], []>} : vector<4x64xf32>, vector<64x64xf32>, vector<4x64xf32> -> vector<4x64xf32>
    %154 = arith.addf %149, %153 : vector<4x64xf32>
    %155 = math.tanh %154 : vector<4x64xf32>
    %cst_85 = arith.constant dense<0.000000e+00> : vector<4x64xf32>
    %156 = tpu.matmul %155, %5, %cst_85 {dimension_numbers = #tpu.dot_dimension_numbers<[1], [0], [0], [1], [0, 0, 1, 1], [], []>} : vector<4x64xf32>, vector<64x64xf32>, vector<4x64xf32> -> vector<4x64xf32>
    %157 = arith.addf %156, %152 : vector<4x64xf32>
    %158 = math.tanh %157 : vector<4x64xf32>
    %159 = arith.index_cast %c7_i32 : i32 to index
    %c0_86 = arith.constant 0 : index
    %c0_87 = arith.constant 0 : index
    %160 = vector.load %arg14[%159, %c0_86, %c0_87] : memref<8x4x64xf32, #tpu.memory_space<vmem>>, vector<1x4x64xf32>
    %161 = vector.shape_cast %160 : vector<1x4x64xf32> to vector<4x64xf32>
    %162 = vector.shape_cast %158 : vector<4x64xf32> to vector<1x4x64xf32>
    tpu.vector_store %arg14[%159, %c0_86, %c0_87], %162 {strides = array<i32>} : memref<8x4x64xf32, #tpu.memory_space<vmem>>, vector<1x4x64xf32>,
    %c8_i32 = arith.constant 8 : i32
    %c0_88 = arith.constant 0 : index
    %c0_89 = arith.constant 0 : index
    %163 = vector.load %arg12[%c0_88, %c0_89] : memref<4x64xf32, #tpu.memory_space<vmem>>, vector<4x64xf32>
    tpu.vector_store %arg12[%c0_88, %c0_89], %155 {strides = array<i32>} : memref<4x64xf32, #tpu.memory_space<vmem>>, vector<4x64xf32>,
    %c0_90 = arith.constant 0 : index
    %c0_91 = arith.constant 0 : index
    %164 = vector.load %arg13[%c0_90, %c0_91] : memref<4x64xf32, #tpu.memory_space<vmem>>, vector<4x64xf32>
    tpu.vector_store %arg13[%c0_90, %c0_91], %158 {strides = array<i32>} : memref<4x64xf32, #tpu.memory_space<vmem>>, vector<4x64xf32>,
    %c0_92 = arith.constant 0 : index
    %c0_93 = arith.constant 0 : index
    %c0_94 = arith.constant 0 : index
    %165 = vector.load %arg14[%c0_92, %c0_93, %c0_94] : memref<8x4x64xf32, #tpu.memory_space<vmem>>, vector<8x4x64xf32>
    %c0_95 = arith.constant 0 : index
    %c0_96 = arith.constant 0 : index
    %166 = vector.load %arg9[%c0_95, %c0_96] : memref<1x64xf32, #tpu.memory_space<vmem>>, vector<1x64xf32>
    %167 = vector.shape_cast %166 : vector<1x64xf32> to vector<1x1x64xf32>
    %168 = vector.broadcast %167 : vector<1x1x64xf32> to vector<8x4x64xf32>
    %169 = arith.mulf %165, %168 : vector<8x4x64xf32>
    %cst_97 = arith.constant dense<0.000000e+00> : vector<8x4xf32>
    %170 = vector.multi_reduction <add>, %169, %cst_97 [2] : vector<8x4x64xf32> to vector<8x4xf32>
    %c0_98 = arith.constant 0 : index
    %c0_99 = arith.constant 0 : index
    %171 = vector.load %arg10[%c0_98, %c0_99] : memref<1x1xf32, #tpu.memory_space<vmem>>, vector<1x1xf32>
    %172 = vector.broadcast %171 : vector<1x1xf32> to vector<8x4xf32>
    %173 = arith.addf %170, %172 : vector<8x4xf32>
    %174 = arith.negf %173 : vector<8x4xf32>
    %175 = math.exp %174 : vector<8x4xf32>
    %cst_100 = arith.constant 1.000000e+00 : f32
    %176 = vector.broadcast %cst_100 : f32 to vector<8x4xf32>
    %177 = arith.addf %176, %175 : vector<8x4xf32>
    %178 = arith.divf %176, %177 : vector<8x4xf32>
    %c0_101 = arith.constant 0 : index
    %c0_102 = arith.constant 0 : index
    %c0_103 = arith.constant 0 : index
    %179 = vector.load %arg11[%c0_101, %c0_102, %c0_103] : memref<1x8x4xf32, #tpu.memory_space<vmem>>, vector<1x8x4xf32>
    %180 = vector.shape_cast %179 : vector<1x8x4xf32> to vector<8x4xf32>
    %181 = vector.shape_cast %178 : vector<8x4xf32> to vector<1x8x4xf32>
    tpu.vector_store %arg11[%c0_101, %c0_102, %c0_103], %181 {strides = array<i32>} : memref<1x8x4xf32, #tpu.memory_space<vmem>>, vector<1x8x4xf32>,
    return
  }
  func.func @transform_0(%arg0: i32, %arg1: i32) -> (i32, i32, i32, i32) {
    %c0_i32 = arith.constant 0 : i32
    %c0_i32_0 = arith.constant 0 : i32
    %c0_i32_1 = arith.constant 0 : i32
    return %arg0, %arg1, %c0_i32, %c0_i32_0 : i32, i32, i32, i32
  }
  func.func @transform_1(%arg0: i32, %arg1: i32) -> (i32, i32) {
    %c0_i32 = arith.constant 0 : i32
    %c0_i32_0 = arith.constant 0 : i32
    %c0_i32_1 = arith.constant 0 : i32
    return %c0_i32, %c0_i32_0 : i32, i32
  }
  func.func @transform_2(%arg0: i32, %arg1: i32) -> (i32, i32) {
    %c0_i32 = arith.constant 0 : i32
    %c0_i32_0 = arith.constant 0 : i32
    %c0_i32_1 = arith.constant 0 : i32
    return %c0_i32, %c0_i32_0 : i32, i32
  }
  func.func @transform_3(%arg0: i32, %arg1: i32) -> (i32, i32) {
    %c0_i32 = arith.constant 0 : i32
    %c0_i32_0 = arith.constant 0 : i32
    %c0_i32_1 = arith.constant 0 : i32
    return %c0_i32, %c0_i32_0 : i32, i32
  }
  func.func @transform_4(%arg0: i32, %arg1: i32) -> (i32, i32) {
    %c0_i32 = arith.constant 0 : i32
    %c0_i32_0 = arith.constant 0 : i32
    %c0_i32_1 = arith.constant 0 : i32
    return %c0_i32, %c0_i32_0 : i32, i32
  }
  func.func @transform_5(%arg0: i32, %arg1: i32) -> (i32, i32) {
    %c0_i32 = arith.constant 0 : i32
    %c0_i32_0 = arith.constant 0 : i32
    %c0_i32_1 = arith.constant 0 : i32
    return %c0_i32, %c0_i32_0 : i32, i32
  }
  func.func @transform_6(%arg0: i32, %arg1: i32) -> (i32, i32) {
    %c0_i32 = arith.constant 0 : i32
    %c0_i32_0 = arith.constant 0 : i32
    %c0_i32_1 = arith.constant 0 : i32
    return %c0_i32, %c0_i32_0 : i32, i32
  }
  func.func @transform_7(%arg0: i32, %arg1: i32) -> (i32, i32) {
    %c0_i32 = arith.constant 0 : i32
    %c0_i32_0 = arith.constant 0 : i32
    %c0_i32_1 = arith.constant 0 : i32
    return %c0_i32, %c0_i32_0 : i32, i32
  }
  func.func @transform_8(%arg0: i32, %arg1: i32) -> (i32, i32) {
    %c0_i32 = arith.constant 0 : i32
    %c0_i32_0 = arith.constant 0 : i32
    %c0_i32_1 = arith.constant 0 : i32
    return %c0_i32, %c0_i32_0 : i32, i32
  }
  func.func @transform_9(%arg0: i32, %arg1: i32) -> (i32, i32, i32) {
    %c0_i32 = arith.constant 0 : i32
    %c0_i32_0 = arith.constant 0 : i32
    return %arg0, %arg1, %c0_i32 : i32, i32, i32
  }
}

</mosaic_0001>

<bundles_post_ra>
// kernel: tpu_custom_call.1
= control target key start
LH: loop header
LB: loop body
LE: loop exit
PB: predicated region body
PF: predicated region fallthrough
CT: control target
= control target key end

     0   :  { %s4586_s0 = inlined_call_operand.hbm [shape: f32[1,8,4,16], index: 0, kind: input, shape index: {}]   ;;  %s4587_s1 = inlined_call_operand.hbm [shape: f32[16,64], index: 1, kind: input, shape index: {}]   ;;  %s4588_s2 = inlined_call_operand.vmem [shape: f32[1,64], index: 2, kind: input, shape index: {}]   ;;  %s4589_s3 = inlined_call_operand.hbm [shape: f32[64,64], index: 3, kind: input, shape index: {}]   ;;  %s4590_s4 = inlined_call_operand.hbm [shape: f32[64,64], index: 4, kind: input, shape index: {}]   ;;  %s4591_s5 = inlined_call_operand.hbm [shape: f32[64,64], index: 5, kind: input, shape index: {}]   ;;  %s4592_s6 = inlined_call_operand.vmem [shape: f32[1,64], index: 6, kind: input, shape index: {}]   ;;  %s4593_s7 = inlined_call_operand.vmem [shape: f32[1,64], index: 7, kind: input, shape index: {}]   ;;  %s4594_s8 = inlined_call_operand.<no memory space> [shape: f32[1,1], index: 8, kind: input, shape index: {}]   ;;  %s4595_s9 = inlined_call_operand.vmem [shape: f32[1,8,4], index: 9, kind: output, shape index: {}]  }
   0x1   :  { %v14_v0 = vstv %s4594_s8 }
   0x2   :  { %15 = vst [vmem:[#allocation5] sm:$0x1] %v14_v0 }
   0x3   :  { %16 = vsyncpa [#allocation7], 0 }
   0x4   :  { %17 = vsyncpa [#allocation9], 0 }
   0x5   :  { %18 = vsyncpa [#allocation12], 0  ;;  %s4054_s11 = smov [#allocation8]   ;;  %s3938_s15 = scalar_lea.hbm %s4587_s1, 256 }
   0x6   :  { %s36_s12 = sshll.u32 %s4054_s11, 4  ;;  %p3939_p0 = scmp.ne.s32.totalorder %s4587_s1, %s3938_s15  ;;  %s37_s12 = int_to_ptr.vmem [resolvable:$true] %s36_s12 }
   0x7   :  { %p3942_p1 = scmp.lt.u32.totalorder %s3938_s15, %s4587_s1 }
   0x9   :  { %p3944_p2 = pnand %p3942_p1, %p3939_p0 }
   0xb   :  { %3947 = shalt.err (!%p3944_p2)
}
   0xc   :  { %s3948_s8 = scalar_lea.vmem %s37_s12, 256  ;;  %p3953_p4 = scmp.lt.s32.totalorder %s37_s12, %s37_s12 }
   0xd   :  { %p3949_p3 = scmp.ne.s32.totalorder %s37_s12, %s3948_s8  ;;  %p3954_p5 = scmp.lt.s32.totalorder %s3948_s8, %s3948_s8 }
   0xf   :  { %p3955_p6 = por %p3954_p5, %p3953_p4 }
  0x11   :  { %p3956_p7 = pnand %p3955_p6, %p3949_p3 }
  0x13   :  { %3959 = shalt.err (!%p3956_p7)
}
  0x14   :  { %s4055_s20 = smov 128   ;;  %s4056_s21 = smov 8  }
  0x15   :  { %42 = dma.hbm_to_vmem [thread:$0]  %s4587_s1, 256, %s37_s12, [#allocation9], %s4055_s20, %s4055_s20, %s4056_s21  }
  0x16   :  { %s4057_s24 = smov [#allocation11]   ;;  %s4058_s26 = smov [#allocation6]  }
  0x17   :  { %s62_s25 = sshll.u32 %s4057_s24, 4  ;;  %s24_s27 = sshll.u32 %s4058_s26, 4  ;;  %s63_s25 = int_to_ptr.vmem [resolvable:$true] %s62_s25  ;;  %s25_s27 = int_to_ptr.vmem [resolvable:$true] %s24_s27 }
  0x18   :  { %s3960_s30 = scalar_lea.hbm %s4590_s4, 1024 }
  0x19   :  { %p3961_p8 = scmp.ne.s32.totalorder %s4590_s4, %s3960_s30  ;;  %p3964_p9 = scmp.lt.u32.totalorder %s3960_s30, %s4590_s4 }
  0x1b   :  { %p3966_p10 = pnand %p3964_p9, %p3961_p8 }
  0x1d   :  { %3969 = shalt.err (!%p3966_p10)
}
  0x1e   :  { %s3970_s1 = scalar_lea.vmem %s63_s25, 1024  ;;  %p3975_p12 = scmp.lt.s32.totalorder %s63_s25, %s63_s25 }
  0x1f   :  { %p3971_p11 = scmp.ne.s32.totalorder %s63_s25, %s3970_s1  ;;  %p3976_p13 = scmp.lt.s32.totalorder %s3970_s1, %s3970_s1 }
  0x21   :  { %p3977_p0 = por %p3976_p13, %p3975_p12 }
  0x23   :  { %p3978_p1 = pnand %p3977_p0, %p3971_p11 }
  0x25   :  { %3981 = shalt.err (!%p3978_p1)
}
  0x26   :  { %68 = dma.hbm_to_vmem [thread:$0]  %s4590_s4, 1024, %s63_s25, [#allocation12], %s4055_s20, %s4055_s20, %s4056_s21  }
  0x27   :  { %s3982_s18 = scalar_lea.hbm %s4586_s0, 512 }
  0x28   :  { %p3983_p2 = scmp.ne.s32.totalorder %s4586_s0, %s3982_s18  ;;  %p3986_p3 = scmp.lt.u32.totalorder %s3982_s18, %s4586_s0 }
  0x2a   :  { %p3988_p4 = pnand %p3986_p3, %p3983_p2 }
  0x2c   :  { %3991 = shalt.err (!%p3988_p4)
}
  0x2d   :  { %s3992_s24 = scalar_lea.vmem %s25_s27, 512  ;;  %p3997_p6 = scmp.lt.s32.totalorder %s25_s27, %s25_s27 }
  0x2e   :  { %p3993_p5 = scmp.ne.s32.totalorder %s25_s27, %s3992_s24  ;;  %p3998_p7 = scmp.lt.s32.totalorder %s3992_s24, %s3992_s24 }
  0x30   :  { %p3999_p8 = por %p3998_p7, %p3997_p6 }
  0x32   :  { %p4000_p9 = pnand %p3999_p8, %p3993_p5 }
  0x34   :  { %4003 = shalt.err (!%p4000_p9)
}
  0x35   :  { %s4059_s4 = smov 64   ;;  %s4060_s25 = smov 4  }
  0x36   :  { %30 = dma.hbm_to_vmem [thread:$0]  %s4586_s0, 512, %s25_s27, [#allocation7], %s4059_s4, %s4059_s4, %s4060_s25  }
  0x37   :  { %s4061_s29 = smov [#allocation10]   ;;  %s4062_s10 = smov [#allocation13]  }
  0x38   :  { %s50_s30 = sshll.u32 %s4061_s29, 4  ;;  %s74_s11 = sshll.u32 %s4062_s10, 4  ;;  %s51_s30 = int_to_ptr.vmem [resolvable:$true] %s50_s30  ;;  %s75_s11 = int_to_ptr.vmem [resolvable:$true] %s74_s11 }
  0x39   :  { %s4004_s1 = scalar_lea.hbm %s4589_s3, 1024 }
  0x3a   :  { %p4005_p10 = scmp.ne.s32.totalorder %s4589_s3, %s4004_s1  ;;  %p4008_p11 = scmp.lt.u32.totalorder %s4004_s1, %s4589_s3 }
  0x3c   :  { %p4010_p12 = pnand %p4008_p11, %p4005_p10 }
  0x3e   :  { %4013 = shalt.err (!%p4010_p12)
}
  0x3f   :  { %s4014_s0 = scalar_lea.vmem %s51_s30, 1024  ;;  %p4019_p0 = scmp.lt.s32.totalorder %s51_s30, %s51_s30 }
  0x40   :  { %p4015_p13 = scmp.ne.s32.totalorder %s51_s30, %s4014_s0  ;;  %p4020_p1 = scmp.lt.s32.totalorder %s4014_s0, %s4014_s0 }
  0x42   :  { %p4021_p2 = por %p4020_p1, %p4019_p0 }
  0x44   :  { %p4022_p3 = pnand %p4021_p2, %p4015_p13 }
  0x46   :  { %4025 = shalt.err (!%p4022_p3)
}
  0x47   :  { %56 = dma.hbm_to_vmem [thread:$0]  %s4589_s3, 1024, %s51_s30, [#allocation9], %s4055_s20, %s4055_s20, %s4056_s21  }
  0x48   :  { %s4026_s22 = scalar_lea.hbm %s4591_s5, 1024 }
  0x49   :  { %p4027_p4 = scmp.ne.s32.totalorder %s4591_s5, %s4026_s22  ;;  %p4030_p5 = scmp.lt.u32.totalorder %s4026_s22, %s4591_s5 }
  0x4b   :  { %p4032_p6 = pnand %p4030_p5, %p4027_p4 }
  0x4d   :  { %4035 = shalt.err (!%p4032_p6)
}
  0x4e   :  { %s4036_s26 = scalar_lea.vmem %s75_s11, 1024  ;;  %p4041_p8 = scmp.lt.s32.totalorder %s75_s11, %s75_s11 }
  0x4f   :  { %p4037_p7 = scmp.ne.s32.totalorder %s75_s11, %s4036_s26  ;;  %p4042_p9 = scmp.lt.s32.totalorder %s4036_s26, %s4036_s26 }
  0x51   :  { %p4043_p10 = por %p4042_p9, %p4041_p8 }
  0x53   :  { %p4044_p11 = pnand %p4043_p10, %p4037_p7 }
  0x55   :  { %4047 = shalt.err (!%p4044_p11)
}
  0x56   :  { %80 = dma.hbm_to_vmem [thread:$0]  %s4591_s5, 1024, %s75_s11, [#allocation12], %s4055_s20, %s4055_s20, %s4056_s21  }
  0x57   :  { %4048 = dma.done.wait [#allocation7], 512  }
  0x58   :  { %4049 = vsyncadd [#allocation7], 4294966784 }
  0x59   :  { %4050 = dma.done.wait [#allocation9], 1280  }
  0x5a   :  { %4051 = vsyncadd [#allocation9], 4294966016 }
  0x5b   :  { %4052 = dma.done.wait [#allocation12], 2048  }
  0x5c   :  { %4053 = vsyncadd [#allocation12], 4294965248  ;;  %v4063_v1 = vmov 0.0|0.0   ;;  %vm4064_vm0 = vmmov 0   ;;  %v4065_v2 = vmov 0.0   ;;  %vm106_vm1 = vcmask 519168  }
  0x5d   :  { %3500 = vmatprep.subr.bf16.mxu1 %v4063_v1  ;;  %2992 = vmatprep.mubr.msk.f32.mxu1 %vm4064_vm0, %v4065_v2  ;;  %108 = vst.msk [vmem:[#allocation3] sm:$0xf] %vm106_vm1, %v4065_v2  ;;  %107 = vst.msk [vmem:[#allocation2] sm:$0xf] %vm106_vm1, %v4065_v2  ;;  %v109_v3 = vld [vmem:[#allocation8] sm:$0xff]  ;;  %v110_v4 = vld [vmem:[#allocation8 + $0x8] sm:$0xff] }
  0x5e   :  { %3539 = vmatprep.subr.bf16.mxu0 %v4063_v1  ;;  %3056 = vmatprep.mubr.msk.f32.mxu0 %vm4064_vm0, %v4065_v2  ;;  %v4202_v5 = vpack.c.bf16 %v110_v4, %v109_v3  ;;  %v127_v6 = vld [vmem:[#allocation13] sm:$0xff]  ;;  %v128_v7 = vld [vmem:[#allocation13 + $0x8] sm:$0xff]  ;;  %v139_v8 = vld [vmem:[#allocation6] sm:$0xf]  ;;  %vm146_vm2 = vcmask 130048   ;;  %vm226_vm3 = vcmask 523264  }
  0x5f   :  { %v4205_v9 = vpack.c.bf16 %v128_v7, %v127_v6  ;;  %v129_v10 = vld [vmem:[#allocation13 + $0x10] sm:$0xff]  ;;  %v130_v11 = vld [vmem:[#allocation13 + $0x18] sm:$0xff]  ;;  %v131_v13 = vld [vmem:[#allocation13 + $0x20] sm:$0xff]  ;;  %vm2680_vm4 = vcmask 1041409   ;;  %vm2682_vm5 = vcmask 1042434   ;;  %vm2684_vm6 = vcmask 1043459  }
  0x60   :  { %3502 = vmatpush3.bf16.msra.mxu1 %v4202_v5  ;;  %3541 = vmatpush3.bf16.msra.mxu0 %v4202_v5  ;;  %v4212_v12 = vpack.c.bf16 %v130_v11, %v129_v10  ;;  %v132_v14 = vld [vmem:[#allocation13 + $0x28] sm:$0xff]  ;;  %v133_v16 = vld [vmem:[#allocation13 + $0x30] sm:$0xff]  ;;  %v134_v17 = vld [vmem:[#allocation13 + $0x38] sm:$0xff]  ;;  %vm2686_vm7 = vcmask 1044484   ;;  %vm2688_vm8 = vcmask 1045509   ;;  %vm2690_vm9 = vcmask 1046534  }
  0x61   :  { %3503 = vmatprep.subr.bf16.mxu1 %v4063_v1  ;;  %3542 = vmatprep.subr.bf16.mxu0 %v4063_v1  ;;  %v4218_v15 = vpack.c.bf16 %v132_v14, %v131_v13  ;;  %v4222_v18 = vpack.c.bf16 %v134_v17, %v133_v16  ;;  %v111_v19 = vld [vmem:[#allocation10] sm:$0xff]  ;;  %v112_v20 = vld [vmem:[#allocation10 + $0x8] sm:$0xff]  ;;  %v113_v23 = vld [vmem:[#allocation10 + $0x10] sm:$0xff]  ;;  %vm2692_vm10 = vcmask 1047559   ;;  %vm2695_vm11 = vcmask 31744  }
  0x62   :  { %v4226_v22 = vpack.c.bf16 %v112_v20, %v111_v19  ;;  %v114_v24 = vld [vmem:[#allocation10 + $0x18] sm:$0xff]  ;;  %v115_v26 = vld [vmem:[#allocation10 + $0x20] sm:$0xff]  ;;  %v116_v27 = vld [vmem:[#allocation10 + $0x28] sm:$0xff] }
  0x63   :  { %2993 = vmatmul.mubr.msk.f32.vlgmr.msra.gmra.mrb[0].mxu1 %vm146_vm2, %v139_v8  ;;  %v4231_v25 = vpack.c.bf16 %v114_v24, %v113_v23  ;;  %v4237_v28 = vpack.c.bf16 %v116_v27, %v115_v26  ;;  %v117_v29 = vld [vmem:[#allocation10 + $0x30] sm:$0xff]  ;;  %v118_v30 = vld [vmem:[#allocation10 + $0x38] sm:$0xff]  ;;  %v119_v32 = vld [vmem:[#allocation11] sm:$0xff] }
  0x64   :  { %3505 = vmatpush3.bf16.msra.mxu1 %v4205_v9  ;;  %3011 = vmatprep.mubr.msk.f32.mxu1 %vm4064_vm0, %v4065_v2  ;;  %v138_v21 = vld [vmem:[#allocation3] sm:$0xf]  ;;  %v4241_v31 = vpack.c.bf16 %v118_v30, %v117_v29  ;;  %v137_v34 = vld [vmem:[#allocation2] sm:$0xf]  ;;  %v121_v36 = vld [vmem:[#allocation11 + $0x10] sm:$0xff] }
  0x65   :  { %3506 = vmatprep.subr.bf16.mxu1 %v4063_v1  ;;  %v120_v33 = vld [vmem:[#allocation11 + $0x8] sm:$0xff]  ;;  %v122_v37 = vld [vmem:[#allocation11 + $0x18] sm:$0xff]  ;;  %v123_v39 = vld [vmem:[#allocation11 + $0x20] sm:$0xff] }
  0x66   :  { %v4245_v35 = vpack.c.bf16 %v120_v33, %v119_v32  ;;  %v4253_v38 = vpack.c.bf16 %v122_v37, %v121_v36  ;;  %v124_v40 = vld [vmem:[#allocation11 + $0x28] sm:$0xff]  ;;  %v125_v42 = vld [vmem:[#allocation11 + $0x30] sm:$0xff]  ;;  %v126_v43 = vld [vmem:[#allocation11 + $0x38] sm:$0xff] }
  0x67   :  { %v4257_v41 = vpack.c.bf16 %v124_v40, %v123_v39  ;;  %v4260_v44 = vpack.c.bf16 %v126_v43, %v125_v42  ;;  %v452_v45 = vld [vmem:[#allocation6 + $0x4] sm:$0xf]  ;;  %v4279_v46 = vld [vmem:[%s4588_s2] ss:$0 sm:$0xff]  ;;  %v748_v60 = vld [vmem:[#allocation6 + $0x8] sm:$0xf] }
  0x68   :  { %3508 = vmatpush3.bf16.msra.mxu1 %v4212_v12  ;;  %3057 = vmatmul.mubr.msk.f32.vlgmr.msra.gmra.mrb[0].mxu0 %vm146_vm2, %v452_v45  ;;  %v4290_v51 = vld [vmem:[%s4592_s6] ss:$0 sm:$0xff]  ;;  %v1044_v13 = vld [vmem:[#allocation6 + $0xc] sm:$0xf]  ;;  %v1340_v30 = vld [vmem:[#allocation6 + $0x10] sm:$0xf] }
  0x69   :  { %3509 = vmatprep.subr.bf16.mxu1 %v4063_v1  ;;  %3544 = vmatpush3.bf16.msra.mxu0 %v4205_v9  ;;  %v4303_v56 = vld [vmem:[%s4593_s7] ss:$0 sm:$0xff] }
  0x6a   :  { %3075 = vmatprep.mubr.msk.f32.mxu0 %vm4064_vm0, %v4065_v2  ;;  %3545 = vmatprep.subr.bf16.mxu0 %v4063_v1 }
  0x6c   :  { %3511 = vmatpush3.bf16.msra.mxu1 %v4218_v15 }
  0x6d   :  { %3512 = vmatprep.subr.bf16.mxu1 %v4063_v1  ;;  %3547 = vmatpush3.bf16.msra.mxu0 %v4212_v12 }
  0x6e   :  { %3548 = vmatprep.subr.bf16.mxu0 %v4063_v1 }
  0x70   :  { %3514 = vmatpush3.bf16.msra.mxu1 %v4222_v18 }
  0x71   :  { %3515 = vmatprep.subr.bf16.mxu1 %v4063_v1  ;;  %3550 = vmatpush3.bf16.msra.mxu0 %v4218_v15 }
  0x72   :  { %3551 = vmatprep.subr.bf16.mxu0 %v4063_v1 }
  0x73   :  { %3012 = vmatmul.mubr.msk.f32.vlgmr.msra.gmra.mrb[2].mxu1 %vm226_vm3, %v138_v21 }
  0x74   :  { %3517 = vmatpush3.bf16.msra.mxu1 %v4226_v22  ;;  %3030 = vmatprep.mubr.msk.f32.mxu1 %vm4064_vm0, %v4065_v2 }
  0x75   :  { %3518 = vmatprep.subr.bf16.mxu1 %v4063_v1  ;;  %3553 = vmatpush3.bf16.msra.mxu0 %v4222_v18 }
  0x76   :  { %3554 = vmatprep.subr.bf16.mxu0 %v4063_v1 }
  0x78   :  { %3520 = vmatpush3.bf16.msra.mxu1 %v4231_v25 }
  0x79   :  { %3521 = vmatprep.subr.bf16.mxu1 %v4063_v1 }
  0x7c   :  { %3523 = vmatpush3.bf16.msra.mxu1 %v4237_v28 }
  0x7d   :  { %3524 = vmatprep.subr.bf16.mxu1 %v4063_v1 }
  0x80   :  { %3526 = vmatpush3.bf16.msra.mxu1 %v4241_v31 }
  0x81   :  { %3527 = vmatprep.subr.bf16.mxu1 %v4063_v1 }
  0x83   :  { %3031 = vmatmul.mubr.msk.f32.vlgmr.msra.gmra.mrb[0].mxu1 %vm226_vm3, %v137_v34 }
  0x84   :  { %3529 = vmatpush3.bf16.msra.mxu1 %v4245_v35  ;;  %3049 = vmatprep.mubr.msk.f32.mxu1 %vm4064_vm0, %v4065_v2 }
  0x85   :  { %3530 = vmatprep.subr.bf16.mxu1 %v4063_v1 }
  0x88   :  { %3532 = vmatpush3.bf16.msra.mxu1 %v4253_v38 }
  0x89   :  { %3533 = vmatprep.subr.bf16.mxu1 %v4063_v1 }
  0x8c   :  { %3535 = vmatpush3.bf16.msra.mxu1 %v4257_v41 }
  0x8d   :  { %3536 = vmatprep.subr.bf16.mxu1 %v4063_v1 }
  0x90   :  { %3538 = vmatpush3.bf16.msra.mxu1 %v4260_v44 }
  0x91   :  { %3578 = vmatprep.subr.bf16.mxu1 %v4063_v1 }
 0x156   :  { %v369_v47 = vpop.f32.mrb[0].mxu1 }
 0x157   :  { %v3812_v48 = vadd.f32 %v4279_v46, %v369_v47  ;;  %v3032_v49 = vpop.f32.mrb[1].mxu1 }
 0x159   :  { %3874 = vtanh.f32 %v3812_v48  ;;  %v1636_v48 = vld [vmem:[#allocation6 + $0x14] sm:$0xf] }
 0x163   :  { %v3875_v50 = vpop.eup %3874 }
 0x164   :  { %3050 = vmatmul.mubr.msk.f32.vlgmr.msra.gmra.mrb[2].mxu1 %vm226_vm3, %v3875_v50 }
 0x165   :  { %3580 = vmatpush3.bf16.msra.mxu1 %v4202_v5  ;;  %3120 = vmatprep.mubr.msk.f32.mxu1 %vm4064_vm0, %v4065_v2 }
 0x166   :  { %3581 = vmatprep.subr.bf16.mxu1 %v4063_v1 }
 0x168   :  { %3121 = vmatmul.mubr.msk.f32.vlgmr.msra.gmra.mrb[4].mxu1 %vm146_vm2, %v748_v60 }
 0x169   :  { %3583 = vmatpush3.bf16.msra.mxu1 %v4205_v9  ;;  %3139 = vmatprep.mubr.msk.f32.mxu1 %vm4064_vm0, %v4065_v2 }
 0x16a   :  { %3584 = vmatprep.subr.bf16.mxu1 %v4063_v1 }
 0x16d   :  { %3586 = vmatpush3.bf16.msra.mxu1 %v4212_v12 }
 0x16e   :  { %3587 = vmatprep.subr.bf16.mxu1 %v4063_v1 }
 0x171   :  { %3589 = vmatpush3.bf16.msra.mxu1 %v4218_v15 }
 0x172   :  { %3590 = vmatprep.subr.bf16.mxu1 %v4063_v1 }
 0x175   :  { %3592 = vmatpush3.bf16.msra.mxu1 %v4222_v18 }
 0x176   :  { %3593 = vmatprep.subr.bf16.mxu1 %v4063_v1 }
 0x237   :  { %v444_v52 = vpop.f32.mrb[2].mxu1 }
 0x238   :  { %v3813_v53 = vadd.f32 %v4290_v51, %v444_v52  ;;  %v3051_v54 = vpop.f32.mrb[3].mxu1 }
 0x23a   :  { %3876 = vtanh.f32 %v3813_v53 }
 0x244   :  { %v3877_v55 = vpop.eup %3876 }
 0x245   :  { %450 = vst.msk [vmem:[#allocation4] sm:$0xf] %vm106_vm1, %v3877_v55  ;;  %3076 = vmatmul.mubr.msk.f32.vlgmr.msra.gmra.mrb[2].mxu0 %vm226_vm3, %v3877_v55 }
 0x246   :  { %3556 = vmatpush3.bf16.msra.mxu0 %v4226_v22  ;;  %3094 = vmatprep.mubr.msk.f32.mxu0 %vm4064_vm0, %v4065_v2 }
 0x247   :  { %3557 = vmatprep.subr.bf16.mxu0 %v4063_v1 }
 0x24a   :  { %3559 = vmatpush3.bf16.msra.mxu0 %v4231_v25 }
 0x24b   :  { %3560 = vmatprep.subr.bf16.mxu0 %v4063_v1 }
 0x24c   :  { %v2525_v57 = vld [vmem:[#allocation4] sm:$0xf] }
 0x24d   :  { %v2540_v58 = vmul.f32 %v4303_v56, %v2525_v57 }
 0x24e   :  { %3562 = vmatpush3.bf16.msra.mxu0 %v4237_v28 }
 0x24f   :  { %3563 = vmatprep.subr.bf16.mxu0 %v4063_v1  ;;  %v2548_v59 = vsel %vm106_vm1, %v2540_v58, 0.0 }
 0x250   :  { %2549 = vadd.xlane.f32.xlu0 %v2548_v59 }
 0x252   :  { %3565 = vmatpush3.bf16.msra.mxu0 %v4241_v31 }
 0x253   :  { %3566 = vmatprep.subr.bf16.mxu0 %v4063_v1 }
 0x255   :  { %3095 = vmatmul.mubr.msk.f32.vlgmr.msra.gmra.mrb[0].mxu0 %vm226_vm3, %v3875_v50 }
 0x256   :  { %3568 = vmatpush3.bf16.msra.mxu0 %v4245_v35  ;;  %3113 = vmatprep.mubr.msk.f32.mxu0 %vm4064_vm0, %v4065_v2 }
 0x257   :  { %3569 = vmatprep.subr.bf16.mxu0 %v4063_v1 }
 0x25a   :  { %3571 = vmatpush3.bf16.msra.mxu0 %v4253_v38 }
 0x25b   :  { %3572 = vmatprep.subr.bf16.mxu0 %v4063_v1 }
 0x25e   :  { %3574 = vmatpush3.bf16.msra.mxu0 %v4257_v41 }
 0x25f   :  { %3575 = vmatprep.subr.bf16.mxu0 %v4063_v1 }
 0x262   :  { %3577 = vmatpush3.bf16.msra.mxu0 %v4260_v44 }
 0x263   :  { %3617 = vmatprep.subr.bf16.mxu0 %v4063_v1 }
 0x328   :  { %v665_v61 = vpop.f32.mrb[0].mxu0 }
 0x329   :  { %v3814_v62 = vadd.f32 %v4279_v46, %v665_v61  ;;  %v3096_v63 = vpop.f32.mrb[1].mxu0 }
 0x32b   :  { %3878 = vtanh.f32 %v3814_v62  ;;  %v1932_v62 = vld [vmem:[#allocation6 + $0x18] sm:$0xf] }
 0x335   :  { %v3879_v0 = vpop.eup %3878 }
 0x336   :  { %3114 = vmatmul.mubr.msk.f32.vlgmr.msra.gmra.mrb[2].mxu0 %vm226_vm3, %v3879_v0 }
 0x337   :  { %3619 = vmatpush3.bf16.msra.mxu0 %v4202_v5  ;;  %3184 = vmatprep.mubr.msk.f32.mxu0 %vm4064_vm0, %v4065_v2 }
 0x338   :  { %3620 = vmatprep.subr.bf16.mxu0 %v4063_v1 }
 0x33a   :  { %3185 = vmatmul.mubr.msk.f32.vlgmr.msra.gmra.mrb[4].mxu0 %vm146_vm2, %v1044_v13 }
 0x33b   :  { %3622 = vmatpush3.bf16.msra.mxu0 %v4205_v9  ;;  %3203 = vmatprep.mubr.msk.f32.mxu0 %vm4064_vm0, %v4065_v2 }
 0x33c   :  { %3623 = vmatprep.subr.bf16.mxu0 %v4063_v1 }
 0x33f   :  { %3625 = vmatpush3.bf16.msra.mxu0 %v4212_v12 }
 0x340   :  { %3626 = vmatprep.subr.bf16.mxu0 %v4063_v1 }
 0x343   :  { %3628 = vmatpush3.bf16.msra.mxu0 %v4218_v15 }
 0x344   :  { %3629 = vmatprep.subr.bf16.mxu0 %v4063_v1 }
 0x347   :  { %3631 = vmatpush3.bf16.msra.mxu0 %v4222_v18 }
 0x348   :  { %3632 = vmatprep.subr.bf16.mxu0 %v4063_v1 }
 0x409   :  { %v740_v3 = vpop.f32.mrb[2].mxu0 }
 0x40a   :  { %v3815_v4 = vadd.f32 %v4290_v51, %v740_v3  ;;  %v3115_v6 = vpop.f32.mrb[3].mxu0 }
 0x40c   :  { %3880 = vtanh.f32 %v3815_v4 }
 0x416   :  { %v3881_v7 = vpop.eup %3880 }
 0x417   :  { %746 = vst.msk [vmem:[#allocation4 + $0x4] sm:$0xf] %vm106_vm1, %v3881_v7  ;;  %3140 = vmatmul.mubr.msk.f32.vlgmr.msra.gmra.mrb[6].mxu1 %vm226_vm3, %v3881_v7 }
 0x418   :  { %3595 = vmatpush3.bf16.msra.mxu1 %v4226_v22  ;;  %3158 = vmatprep.mubr.msk.f32.mxu1 %vm4064_vm0, %v4065_v2 }
 0x419   :  { %3596 = vmatprep.subr.bf16.mxu1 %v4063_v1 }
 0x41c   :  { %3598 = vmatpush3.bf16.msra.mxu1 %v4231_v25 }
 0x41d   :  { %3599 = vmatprep.subr.bf16.mxu1 %v4063_v1 }
 0x41e   :  { %v2526_v8 = vld [vmem:[#allocation4 + $0x4] sm:$0xf] }
 0x41f   :  { %v2541_v10 = vmul.f32 %v4303_v56, %v2526_v8 }
 0x420   :  { %3601 = vmatpush3.bf16.msra.mxu1 %v4237_v28 }
 0x421   :  { %3602 = vmatprep.subr.bf16.mxu1 %v4063_v1  ;;  %v2551_v11 = vsel %vm106_vm1, %v2541_v10, 0.0 }
 0x422   :  { %2552 = vadd.xlane.f32.xlu0 %v2551_v11 }
 0x424   :  { %3604 = vmatpush3.bf16.msra.mxu1 %v4241_v31 }
 0x425   :  { %3605 = vmatprep.subr.bf16.mxu1 %v4063_v1 }
 0x427   :  { %3159 = vmatmul.mubr.msk.f32.vlgmr.msra.gmra.mrb[4].mxu1 %vm226_vm3, %v3879_v0 }
 0x428   :  { %3607 = vmatpush3.bf16.msra.mxu1 %v4245_v35  ;;  %3177 = vmatprep.mubr.msk.f32.mxu1 %vm4064_vm0, %v4065_v2 }
 0x429   :  { %3608 = vmatprep.subr.bf16.mxu1 %v4063_v1 }
 0x42c   :  { %3610 = vmatpush3.bf16.msra.mxu1 %v4253_v38 }
 0x42d   :  { %3611 = vmatprep.subr.bf16.mxu1 %v4063_v1 }
 0x430   :  { %3613 = vmatpush3.bf16.msra.mxu1 %v4257_v41 }
 0x431   :  { %3614 = vmatprep.subr.bf16.mxu1 %v4063_v1 }
 0x434   :  { %3616 = vmatpush3.bf16.msra.mxu1 %v4260_v44 }
 0x435   :  { %3656 = vmatprep.subr.bf16.mxu1 %v4063_v1 }
 0x4fa   :  { %v961_v14 = vpop.f32.mrb[4].mxu1 }
 0x4fb   :  { %v3816_v16 = vadd.f32 %v4279_v46, %v961_v14  ;;  %v3160_v17 = vpop.f32.mrb[5].mxu1  ;;  %v2228_v14 = vld [vmem:[#allocation6 + $0x1c] sm:$0xf] }
 0x4fd   :  { %3882 = vtanh.f32 %v3816_v16 }
 0x507   :  { %v3883_v19 = vpop.eup %3882 }
 0x508   :  { %3178 = vmatmul.mubr.msk.f32.vlgmr.msra.gmra.mrb[6].mxu1 %vm226_vm3, %v3883_v19 }
 0x509   :  { %3658 = vmatpush3.bf16.msra.mxu1 %v4202_v5  ;;  %3248 = vmatprep.mubr.msk.f32.mxu1 %vm4064_vm0, %v4065_v2 }
 0x50a   :  { %3659 = vmatprep.subr.bf16.mxu1 %v4063_v1 }
 0x50c   :  { %3249 = vmatmul.mubr.msk.f32.vlgmr.msra.gmra.mrb[8].mxu1 %vm146_vm2, %v1340_v30 }
 0x50d   :  { %3661 = vmatpush3.bf16.msra.mxu1 %v4205_v9  ;;  %3267 = vmatprep.mubr.msk.f32.mxu1 %vm4064_vm0, %v4065_v2 }
 0x50e   :  { %3662 = vmatprep.subr.bf16.mxu1 %v4063_v1 }
 0x511   :  { %3664 = vmatpush3.bf16.msra.mxu1 %v4212_v12 }
 0x512   :  { %3665 = vmatprep.subr.bf16.mxu1 %v4063_v1 }
 0x515   :  { %3667 = vmatpush3.bf16.msra.mxu1 %v4218_v15 }
 0x516   :  { %3668 = vmatprep.subr.bf16.mxu1 %v4063_v1 }
 0x519   :  { %3670 = vmatpush3.bf16.msra.mxu1 %v4222_v18 }
 0x51a   :  { %3671 = vmatprep.subr.bf16.mxu1 %v4063_v1 }
 0x5db   :  { %v1036_v20 = vpop.f32.mrb[6].mxu1 }
 0x5dc   :  { %v3817_v21 = vadd.f32 %v4290_v51, %v1036_v20  ;;  %v3179_v23 = vpop.f32.mrb[7].mxu1  ;;  %v4066_v20 = vmov 0  }
 0x5dd   :  { %3873 = vset.pattern.permute.xlu0 %v4066_v20 }
 0x5de   :  { %3884 = vtanh.f32 %v3817_v21 }
 0x5e8   :  { %v3885_v24 = vpop.eup %3884 }
 0x5e9   :  { %1042 = vst.msk [vmem:[#allocation4 + $0x8] sm:$0xf] %vm106_vm1, %v3885_v24  ;;  %3204 = vmatmul.mubr.msk.f32.vlgmr.msra.gmra.mrb[6].mxu0 %vm226_vm3, %v3885_v24 }
 0x5ea   :  { %3634 = vmatpush3.bf16.msra.mxu0 %v4226_v22  ;;  %3222 = vmatprep.mubr.msk.f32.mxu0 %vm4064_vm0, %v4065_v2 }
 0x5eb   :  { %3635 = vmatprep.subr.bf16.mxu0 %v4063_v1 }
 0x5ee   :  { %3637 = vmatpush3.bf16.msra.mxu0 %v4231_v25 }
 0x5ef   :  { %3638 = vmatprep.subr.bf16.mxu0 %v4063_v1 }
 0x5f0   :  { %v2527_v26 = vld [vmem:[#allocation4 + $0x8] sm:$0xf] }
 0x5f1   :  { %v2542_v27 = vmul.f32 %v4303_v56, %v2527_v26 }
 0x5f2   :  { %3640 = vmatpush3.bf16.msra.mxu0 %v4237_v28 }
 0x5f3   :  { %3641 = vmatprep.subr.bf16.mxu0 %v4063_v1  ;;  %v2554_v29 = vsel %vm106_vm1, %v2542_v27, 0.0 }
 0x5f4   :  { %2555 = vadd.xlane.f32.xlu1 %v2554_v29  ;;  %v2550_v29 = vpop.xlane.xlu0 %2549 }
 0x5f6   :  { %3643 = vmatpush3.bf16.msra.mxu0 %v4241_v31 }
 0x5f7   :  { %3644 = vmatprep.subr.bf16.mxu0 %v4063_v1 }
 0x5f8   :  { %v2553_v30 = vpop.xlane.xlu0 %2552 }
 0x5f9   :  { %3223 = vmatmul.mubr.msk.f32.vlgmr.msra.gmra.mrb[4].mxu0 %vm226_vm3, %v3883_v19 }
 0x5fa   :  { %3646 = vmatpush3.bf16.msra.mxu0 %v4245_v35  ;;  %3241 = vmatprep.mubr.msk.f32.mxu0 %vm4064_vm0, %v4065_v2 }
 0x5fb   :  { %3647 = vmatprep.subr.bf16.mxu0 %v4063_v1 }
 0x5fe   :  { %3649 = vmatpush3.bf16.msra.mxu0 %v4253_v38 }
 0x5ff   :  { %3650 = vmatprep.subr.bf16.mxu0 %v4063_v1 }
 0x602   :  { %3652 = vmatpush3.bf16.msra.mxu0 %v4257_v41 }
 0x603   :  { %3653 = vmatprep.subr.bf16.mxu0 %v4063_v1 }
 0x606   :  { %3655 = vmatpush3.bf16.msra.mxu0 %v4260_v44 }
 0x607   :  { %3695 = vmatprep.subr.bf16.mxu0 %v4063_v1 }
 0x6cc   :  { %v1257_v32 = vpop.f32.mrb[4].mxu0 }
 0x6cd   :  { %v3818_v33 = vadd.f32 %v4279_v46, %v1257_v32  ;;  %v3224_v34 = vpop.f32.mrb[5].mxu0 }
 0x6cf   :  { %3886 = vtanh.f32 %v3818_v33 }
 0x6d9   :  { %v3887_v36 = vpop.eup %3886 }
 0x6da   :  { %3242 = vmatmul.mubr.msk.f32.vlgmr.msra.gmra.mrb[6].mxu0 %vm226_vm3, %v3887_v36 }
 0x6db   :  { %3697 = vmatpush3.bf16.msra.mxu0 %v4202_v5  ;;  %3312 = vmatprep.mubr.msk.f32.mxu0 %vm4064_vm0, %v4065_v2 }
 0x6dc   :  { %3698 = vmatprep.subr.bf16.mxu0 %v4063_v1 }
 0x6de   :  { %3313 = vmatmul.mubr.msk.f32.vlgmr.msra.gmra.mrb[8].mxu0 %vm146_vm2, %v1636_v48 }
 0x6df   :  { %3700 = vmatpush3.bf16.msra.mxu0 %v4205_v9  ;;  %3331 = vmatprep.mubr.msk.f32.mxu0 %vm4064_vm0, %v4065_v2 }
 0x6e0   :  { %3701 = vmatprep.subr.bf16.mxu0 %v4063_v1 }
 0x6e3   :  { %3703 = vmatpush3.bf16.msra.mxu0 %v4212_v12 }
 0x6e4   :  { %3704 = vmatprep.subr.bf16.mxu0 %v4063_v1 }
 0x6e7   :  { %3706 = vmatpush3.bf16.msra.mxu0 %v4218_v15 }
 0x6e8   :  { %3707 = vmatprep.subr.bf16.mxu0 %v4063_v1 }
 0x6eb   :  { %3709 = vmatpush3.bf16.msra.mxu0 %v4222_v18 }
 0x6ec   :  { %3710 = vmatprep.subr.bf16.mxu0 %v4063_v1 }
 0x7ad   :  { %v1332_v37 = vpop.f32.mrb[6].mxu0 }
 0x7ae   :  { %v3819_v39 = vadd.f32 %v4290_v51, %v1332_v37  ;;  %v3243_v40 = vpop.f32.mrb[7].mxu0  ;;  %v2556_v37 = vpop.xlane.xlu1 %2555 }
 0x7b0   :  { %3888 = vtanh.f32 %v3819_v39 }
 0x7ba   :  { %v3889_v42 = vpop.eup %3888 }
 0x7bb   :  { %1338 = vst.msk [vmem:[#allocation4 + $0xc] sm:$0xf] %vm106_vm1, %v3889_v42  ;;  %3268 = vmatmul.mubr.msk.f32.vlgmr.msra.gmra.mrb[10].mxu1 %vm226_vm3, %v3889_v42 }
 0x7bc   :  { %3673 = vmatpush3.bf16.msra.mxu1 %v4226_v22  ;;  %3286 = vmatprep.mubr.msk.f32.mxu1 %vm4064_vm0, %v4065_v2 }
 0x7bd   :  { %3674 = vmatprep.subr.bf16.mxu1 %v4063_v1 }
 0x7c0   :  { %3676 = vmatpush3.bf16.msra.mxu1 %v4231_v25 }
 0x7c1   :  { %3677 = vmatprep.subr.bf16.mxu1 %v4063_v1 }
 0x7c2   :  { %v2528_v43 = vld [vmem:[#allocation4 + $0xc] sm:$0xf] }
 0x7c3   :  { %v2543_v45 = vmul.f32 %v4303_v56, %v2528_v43 }
 0x7c4   :  { %3679 = vmatpush3.bf16.msra.mxu1 %v4237_v28 }
 0x7c5   :  { %3680 = vmatprep.subr.bf16.mxu1 %v4063_v1  ;;  %v2557_v47 = vsel %vm106_vm1, %v2543_v45, 0.0 }
 0x7c6   :  { %2558 = vadd.xlane.f32.xlu1 %v2557_v47 }
 0x7c8   :  { %3682 = vmatpush3.bf16.msra.mxu1 %v4241_v31 }
 0x7c9   :  { %3683 = vmatprep.subr.bf16.mxu1 %v4063_v1 }
 0x7cb   :  { %3287 = vmatmul.mubr.msk.f32.vlgmr.msra.gmra.mrb[8].mxu1 %vm226_vm3, %v3887_v36 }
 0x7cc   :  { %3685 = vmatpush3.bf16.msra.mxu1 %v4245_v35  ;;  %3305 = vmatprep.mubr.msk.f32.mxu1 %vm4064_vm0, %v4065_v2 }
 0x7cd   :  { %3686 = vmatprep.subr.bf16.mxu1 %v4063_v1 }
 0x7d0   :  { %3688 = vmatpush3.bf16.msra.mxu1 %v4253_v38 }
 0x7d1   :  { %3689 = vmatprep.subr.bf16.mxu1 %v4063_v1 }
 0x7d4   :  { %3691 = vmatpush3.bf16.msra.mxu1 %v4257_v41 }
 0x7d5   :  { %3692 = vmatprep.subr.bf16.mxu1 %v4063_v1 }
 0x7d8   :  { %3694 = vmatpush3.bf16.msra.mxu1 %v4260_v44 }
 0x7d9   :  { %3734 = vmatprep.subr.bf16.mxu1 %v4063_v1 }
 0x853   :  { %v2559_v43 = vpop.xlane.xlu1 %2558 }
 0x89e   :  { %v1553_v49 = vpop.f32.mrb[8].mxu1 }
 0x89f   :  { %v3820_v50 = vadd.f32 %v4279_v46, %v1553_v49  ;;  %v3288_v52 = vpop.f32.mrb[9].mxu1 }
 0x8a1   :  { %3890 = vtanh.f32 %v3820_v50 }
 0x8ab   :  { %v3891_v53 = vpop.eup %3890 }
 0x8ac   :  { %3306 = vmatmul.mubr.msk.f32.vlgmr.msra.gmra.mrb[10].mxu1 %vm226_vm3, %v3891_v53 }
 0x8ad   :  { %3736 = vmatpush3.bf16.msra.mxu1 %v4202_v5  ;;  %3376 = vmatprep.mubr.msk.f32.mxu1 %vm4064_vm0, %v4065_v2 }
 0x8ae   :  { %3737 = vmatprep.subr.bf16.mxu1 %v4063_v1 }
 0x8b0   :  { %3377 = vmatmul.mubr.msk.f32.vlgmr.msra.gmra.mrb[12].mxu1 %vm146_vm2, %v1932_v62 }
 0x8b1   :  { %3739 = vmatpush3.bf16.msra.mxu1 %v4205_v9  ;;  %3395 = vmatprep.mubr.msk.f32.mxu1 %vm4064_vm0, %v4065_v2 }
 0x8b2   :  { %3740 = vmatprep.subr.bf16.mxu1 %v4063_v1 }
 0x8b5   :  { %3742 = vmatpush3.bf16.msra.mxu1 %v4212_v12 }
 0x8b6   :  { %3743 = vmatprep.subr.bf16.mxu1 %v4063_v1 }
 0x8b9   :  { %3745 = vmatpush3.bf16.msra.mxu1 %v4218_v15 }
 0x8ba   :  { %3746 = vmatprep.subr.bf16.mxu1 %v4063_v1 }
 0x8bd   :  { %3748 = vmatpush3.bf16.msra.mxu1 %v4222_v18 }
 0x8be   :  { %3749 = vmatprep.subr.bf16.mxu1 %v4063_v1 }
 0x97f   :  { %v1628_v54 = vpop.f32.mrb[10].mxu1 }
 0x980   :  { %v3821_v55 = vadd.f32 %v4290_v51, %v1628_v54  ;;  %v3307_v57 = vpop.f32.mrb[11].mxu1 }
 0x982   :  { %3892 = vtanh.f32 %v3821_v55 }
 0x98c   :  { %v3893_v58 = vpop.eup %3892 }
 0x98d   :  { %1634 = vst.msk [vmem:[#allocation4 + $0x10] sm:$0xf] %vm106_vm1, %v3893_v58  ;;  %3332 = vmatmul.mubr.msk.f32.vlgmr.msra.gmra.mrb[10].mxu0 %vm226_vm3, %v3893_v58 }
 0x98e   :  { %3712 = vmatpush3.bf16.msra.mxu0 %v4226_v22  ;;  %3350 = vmatprep.mubr.msk.f32.mxu0 %vm4064_vm0, %v4065_v2 }
 0x98f   :  { %3713 = vmatprep.subr.bf16.mxu0 %v4063_v1 }
 0x992   :  { %3715 = vmatpush3.bf16.msra.mxu0 %v4231_v25 }
 0x993   :  { %3716 = vmatprep.subr.bf16.mxu0 %v4063_v1 }
 0x994   :  { %v2529_v59 = vld [vmem:[#allocation4 + $0x10] sm:$0xf] }
 0x995   :  { %v2544_v60 = vmul.f32 %v4303_v56, %v2529_v59 }
 0x996   :  { %3718 = vmatpush3.bf16.msra.mxu0 %v4237_v28 }
 0x997   :  { %3719 = vmatprep.subr.bf16.mxu0 %v4063_v1  ;;  %v2560_v61 = vsel %vm106_vm1, %v2544_v60, 0.0 }
 0x998   :  { %2561 = vadd.xlane.f32.xlu0 %v2560_v61 }
 0x99a   :  { %3721 = vmatpush3.bf16.msra.mxu0 %v4241_v31 }
 0x99b   :  { %3722 = vmatprep.subr.bf16.mxu0 %v4063_v1 }
 0x99d   :  { %3351 = vmatmul.mubr.msk.f32.vlgmr.msra.gmra.mrb[8].mxu0 %vm226_vm3, %v3891_v53 }
 0x99e   :  { %3724 = vmatpush3.bf16.msra.mxu0 %v4245_v35  ;;  %3369 = vmatprep.mubr.msk.f32.mxu0 %vm4064_vm0, %v4065_v2 }
 0x99f   :  { %3725 = vmatprep.subr.bf16.mxu0 %v4063_v1 }
 0x9a2   :  { %3727 = vmatpush3.bf16.msra.mxu0 %v4253_v38 }
 0x9a3   :  { %3728 = vmatprep.subr.bf16.mxu0 %v4063_v1 }
 0x9a6   :  { %3730 = vmatpush3.bf16.msra.mxu0 %v4257_v41 }
 0x9a7   :  { %3731 = vmatprep.subr.bf16.mxu0 %v4063_v1 }
 0x9aa   :  { %3733 = vmatpush3.bf16.msra.mxu0 %v4260_v44 }
 0x9ab   :  { %3773 = vmatprep.subr.bf16.mxu0 %v4063_v1 }
 0xa25   :  { %v2562_v32 = vpop.xlane.xlu0 %2561 }
 0xa70   :  { %v1849_v63 = vpop.f32.mrb[8].mxu0 }
 0xa71   :  { %v3822_v0 = vadd.f32 %v4279_v46, %v1849_v63  ;;  %v3352_v3 = vpop.f32.mrb[9].mxu0 }
 0xa73   :  { %3894 = vtanh.f32 %v3822_v0  ;;  %v2646_v0 = vlaneseq }
 0xa7d   :  { %v3895_v4 = vpop.eup %3894 }
 0xa7e   :  { %3370 = vmatmul.mubr.msk.f32.vlgmr.msra.gmra.mrb[10].mxu0 %vm226_vm3, %v3895_v4 }
 0xa7f   :  { %3775 = vmatpush3.bf16.msra.mxu0 %v4202_v5  ;;  %3440 = vmatprep.mubr.msk.f32.mxu0 %vm4064_vm0, %v4065_v2 }
 0xa80   :  { %3776 = vmatprep.subr.bf16.mxu0 %v4063_v1 }
 0xa82   :  { %3441 = vmatmul.mubr.msk.f32.vlgmr.msra.gmra.mrb[12].mxu0 %vm146_vm2, %v2228_v14 }
 0xa83   :  { %3778 = vmatpush3.bf16.msra.mxu0 %v4205_v9  ;;  %3459 = vmatprep.mubr.msk.f32.mxu0 %vm4064_vm0, %v4065_v2 }
 0xa84   :  { %3779 = vmatprep.subr.bf16.mxu0 %v4063_v1 }
 0xa87   :  { %3781 = vmatpush3.bf16.msra.mxu0 %v4212_v12 }
 0xa88   :  { %3782 = vmatprep.subr.bf16.mxu0 %v4063_v1 }
 0xa8b   :  { %3784 = vmatpush3.bf16.msra.mxu0 %v4218_v15 }
 0xa8c   :  { %3785 = vmatprep.subr.bf16.mxu0 %v4063_v1 }
 0xa8f   :  { %3787 = vmatpush3.bf16.msra.mxu0 %v4222_v18 }
 0xa90   :  { %3788 = vmatprep.subr.bf16.mxu0 %v4063_v1 }
 0xb51   :  { %v1924_v6 = vpop.f32.mrb[10].mxu0 }
 0xb52   :  { %v3823_v7 = vadd.f32 %v4290_v51, %v1924_v6  ;;  %v3371_v8 = vpop.f32.mrb[11].mxu0 }
 0xb53   :  { %v2647_v8 = vand.u32 127, %v2646_v0 }
 0xb54   :  { %3896 = vtanh.f32 %v3823_v7 }
 0xb5e   :  { %v3897_v10 = vpop.eup %3896 }
 0xb5f   :  { %1930 = vst.msk [vmem:[#allocation4 + $0x14] sm:$0xf] %vm106_vm1, %v3897_v10  ;;  %3396 = vmatmul.mubr.msk.f32.vlgmr.msra.gmra.mrb[14].mxu1 %vm226_vm3, %v3897_v10  ;;  %v2649_v10 = vshrl.u32 %v2646_v0, 7 }
 0xb60   :  { %3751 = vmatpush3.bf16.msra.mxu1 %v4226_v22  ;;  %3414 = vmatprep.mubr.msk.f32.mxu1 %vm4064_vm0, %v4065_v2 }
 0xb61   :  { %3752 = vmatprep.subr.bf16.mxu1 %v4063_v1 }
 0xb64   :  { %3754 = vmatpush3.bf16.msra.mxu1 %v4231_v25 }
 0xb65   :  { %3755 = vmatprep.subr.bf16.mxu1 %v4063_v1 }
 0xb66   :  { %v2530_v5 = vld [vmem:[#allocation4 + $0x14] sm:$0xf] }
 0xb67   :  { %v2545_v11 = vmul.f32 %v4303_v56, %v2530_v5 }
 0xb68   :  { %3757 = vmatpush3.bf16.msra.mxu1 %v4237_v28 }
 0xb69   :  { %3758 = vmatprep.subr.bf16.mxu1 %v4063_v1  ;;  %v2563_v13 = vsel %vm106_vm1, %v2545_v11, 0.0 }
 0xb6a   :  { %2564 = vadd.xlane.f32.xlu1 %v2563_v13 }
 0xb6c   :  { %3760 = vmatpush3.bf16.msra.mxu1 %v4241_v31 }
 0xb6d   :  { %3761 = vmatprep.subr.bf16.mxu1 %v4063_v1 }
 0xb6f   :  { %3415 = vmatmul.mubr.msk.f32.vlgmr.msra.gmra.mrb[12].mxu1 %vm226_vm3, %v3895_v4 }
 0xb70   :  { %3763 = vmatpush3.bf16.msra.mxu1 %v4245_v35  ;;  %3433 = vmatprep.mubr.msk.f32.mxu1 %vm4064_vm0, %v4065_v2 }
 0xb71   :  { %3764 = vmatprep.subr.bf16.mxu1 %v4063_v1 }
 0xb74   :  { %3766 = vmatpush3.bf16.msra.mxu1 %v4253_v38 }
 0xb75   :  { %3767 = vmatprep.subr.bf16.mxu1 %v4063_v1 }
 0xb78   :  { %3769 = vmatpush3.bf16.msra.mxu1 %v4257_v41 }
 0xb79   :  { %3770 = vmatprep.subr.bf16.mxu1 %v4063_v1 }
 0xb7c   :  { %3772 = vmatpush3.bf16.msra.mxu1 %v4260_v44 }
 0xbf7   :  { %v2565_v49 = vpop.xlane.xlu1 %2564 }
 0xc42   :  { %v2145_v16 = vpop.f32.mrb[12].mxu1 }
 0xc43   :  { %v3824_v9 = vadd.f32 %v4279_v46, %v2145_v16  ;;  %v3416_v17 = vpop.f32.mrb[13].mxu1 }
 0xc45   :  { %3898 = vtanh.f32 %v3824_v9  ;;  %v2650_v9 = vsub.s32 %v2647_v8, %v2649_v10 }
 0xc4f   :  { %v3899_v19 = vpop.eup %3898 }
 0xc50   :  { %3434 = vmatmul.mubr.msk.f32.vlgmr.msra.gmra.mrb[14].mxu1 %vm226_vm3, %v3899_v19 }
 0xd23   :  { %v2220_v12 = vpop.f32.mrb[14].mxu1 }
 0xd24   :  { %v3825_v21 = vadd.f32 %v4290_v51, %v2220_v12  ;;  %v3435_v15 = vpop.f32.mrb[15].mxu1 }
 0xd26   :  { %3900 = vtanh.f32 %v3825_v21 }
 0xd30   :  { %v3901_v23 = vpop.eup %3900 }
 0xd31   :  { %2226 = vst.msk [vmem:[#allocation4 + $0x18] sm:$0xf] %vm106_vm1, %v3901_v23  ;;  %3460 = vmatmul.mubr.msk.f32.vlgmr.msra.gmra.mrb[14].mxu0 %vm226_vm3, %v3901_v23 }
 0xd32   :  { %3790 = vmatpush3.bf16.msra.mxu0 %v4226_v22  ;;  %3478 = vmatprep.mubr.msk.f32.mxu0 %vm4064_vm0, %v4065_v2  ;;  %v2739_v22 = vld [vmem:[#allocation5] ss:$0 sm:$0xff] }
 0xd33   :  { %3791 = vmatprep.subr.bf16.mxu0 %v4063_v1 }
 0xd36   :  { %3793 = vmatpush3.bf16.msra.mxu0 %v4231_v25 }
 0xd37   :  { %3794 = vmatprep.subr.bf16.mxu0 %v4063_v1 }
 0xd38   :  { %v2531_v18 = vld [vmem:[#allocation4 + $0x18] sm:$0xf] }
 0xd39   :  { %v2546_v24 = vmul.f32 %v4303_v56, %v2531_v18 }
 0xd3a   :  { %3796 = vmatpush3.bf16.msra.mxu0 %v4237_v28 }
 0xd3b   :  { %3797 = vmatprep.subr.bf16.mxu0 %v4063_v1  ;;  %v2566_v26 = vsel %vm106_vm1, %v2546_v24, 0.0 }
 0xd3c   :  { %2567 = vadd.xlane.f32.xlu0 %v2566_v26 }
 0xd3e   :  { %3799 = vmatpush3.bf16.msra.mxu0 %v4241_v31 }
 0xd3f   :  { %3800 = vmatprep.subr.bf16.mxu0 %v4063_v1 }
 0xd41   :  { %3479 = vmatmul.mubr.msk.f32.vlgmr.msra.gmra.mrb[12].mxu0 %vm226_vm3, %v3899_v19 }
 0xd42   :  { %3802 = vmatpush3.bf16.msra.mxu0 %v4245_v35  ;;  %3497 = vmatprep.mubr.msk.f32.mxu0 %vm4064_vm0, %v4065_v2 }
 0xd43   :  { %3803 = vmatprep.subr.bf16.mxu0 %v4063_v1 }
 0xd46   :  { %3805 = vmatpush3.bf16.msra.mxu0 %v4253_v38 }
 0xd47   :  { %3806 = vmatprep.subr.bf16.mxu0 %v4063_v1 }
 0xd4a   :  { %3808 = vmatpush3.bf16.msra.mxu0 %v4257_v41 }
 0xd4b   :  { %3809 = vmatprep.subr.bf16.mxu0 %v4063_v1 }
 0xd4e   :  { %3811 = vmatpush3.bf16.msra.mxu0 %v4260_v44 }
 0xd52   :  { %2579 = vperm.xlu0 %3873, %v2739_v22  }
 0xdc9   :  { %v2568_v33 = vpop.xlane.xlu0 %2567 }
 0xdd1   :  { %v2580_v34 = vpop.permute.xlu0 %2579 }
 0xdd2   :  { %v2582_v36 = vadd.f32 %v2580_v34, %v2550_v29  ;;  %v2584_v39 = vadd.f32 %v2580_v34, %v2556_v37  ;;  %v2585_v47 = vadd.f32 %v2580_v34, %v2559_v43  ;;  %v2587_v50 = vadd.f32 %v2580_v34, %v2565_v49 }
 0xdd3   :  { %v2588_v52 = vadd.f32 %v2580_v34, %v2568_v33 }
 0xdd4   :  { %v2740_v40 = vmul.f32 -1.442695, %v2582_v36  ;;  %v2742_v45 = vmul.f32 -1.442695, %v2584_v39  ;;  %v2743_v48 = vmul.f32 -1.442695, %v2585_v47 }
 0xdd5   :  { %v2745_v57 = vmul.f32 -1.442695, %v2587_v50  ;;  %v2746_v58 = vmul.f32 -1.442695, %v2588_v52 }
 0xe14   :  { %v2441_v25 = vpop.f32.mrb[12].mxu0 }
 0xe15   :  { %v3826_v28 = vadd.f32 %v4279_v46, %v2441_v25  ;;  %v3480_v31 = vpop.f32.mrb[13].mxu0 }
 0xe17   :  { %3902 = vtanh.f32 %v3826_v28 }
 0xe21   :  { %v3903_v2 = vpop.eup %3902 }
 0xe22   :  { %2523 = vst.msk [vmem:[#allocation2] sm:$0xf] %vm106_vm1, %v3903_v2  ;;  %3498 = vmatmul.mubr.msk.f32.vlgmr.msra.gmra.mrb[14].mxu0 %vm226_vm3, %v3903_v2 }
 0xef5   :  { %v2516_v35 = vpop.f32.mrb[14].mxu0 }
 0xef6   :  { %v3827_v38 = vadd.f32 %v4290_v51, %v2516_v35  ;;  %v3499_v41 = vpop.f32.mrb[15].mxu0  ;;  %v2583_v51 = vadd.f32 %v2580_v34, %v2553_v30 }
 0xef8   :  { %3904 = vtanh.f32 %v3827_v38  ;;  %v2741_v42 = vmul.f32 -1.442695, %v2583_v51 }
 0xef9   :  { %3906 = vpow2.f32 %v2740_v40 }
 0xefa   :  { %3908 = vpow2.f32 %v2741_v42 }
 0xefb   :  { %3910 = vpow2.f32 %v2742_v45 }
 0xefc   :  { %3912 = vpow2.f32 %v2743_v48 }
 0xf02   :  { %v3905_v1 = vpop.eup %3904 }
 0xf03   :  { %2522 = vst.msk [vmem:[#allocation4 + $0x1c] sm:$0xf] %vm106_vm1, %v3905_v1  ;;  %2524 = vst.msk [vmem:[#allocation3] sm:$0xf] %vm106_vm1, %v3905_v1  ;;  %v3907_v54 = vpop.eup %3906 }
 0xf04   :  { %v3909_v55 = vpop.eup %3908  ;;  %v2614_v59 = vadd.f32 1.0, %v3907_v54 }
 0xf05   :  { %v3911_v60 = vpop.eup %3910  ;;  %v2615_v61 = vadd.f32 1.0, %v3909_v55 }
 0xf06   :  { %v2616_v62 = vadd.f32 1.0, %v3911_v60  ;;  %v3913_v63 = vpop.eup %3912 }
 0xf07   :  { %v2617_v7 = vadd.f32 1.0, %v3913_v63 }
 0xf0a   :  { %v2532_v44 = vld [vmem:[#allocation4 + $0x1c] sm:$0xf] }
 0xf0b   :  { %v2547_v46 = vmul.f32 %v4303_v56, %v2532_v44  ;;  %v2586_v56 = vadd.f32 %v2580_v34, %v2562_v32 }
 0xf0d   :  { %v2569_v27 = vsel %vm106_vm1, %v2547_v46, 0.0  ;;  %v2744_v53 = vmul.f32 -1.442695, %v2586_v56 }
 0xf0e   :  { %2570 = vadd.xlane.f32.xlu1 %v2569_v27 }
 0xf0f   :  { %3914 = vpow2.f32 %v2744_v53 }
 0xf10   :  { %3916 = vpow2.f32 %v2745_v57 }
 0xf11   :  { %3918 = vpow2.f32 %v2746_v58 }
 0xf12   :  { %3920 = vrcp.f32 %v2614_v59 }
 0xf13   :  { %3922 = vrcp.f32 %v2615_v61 }
 0xf14   :  { %3924 = vrcp.f32 %v2616_v62 }
 0xf19   :  { %v3915_v6 = vpop.eup %3914 }
 0xf1a   :  { %v3917_v11 = vpop.eup %3916  ;;  %v2618_v13 = vadd.f32 1.0, %v3915_v6 }
 0xf1b   :  { %v3919_v14 = vpop.eup %3918  ;;  %v2619_v19 = vadd.f32 1.0, %v3917_v11 }
 0xf1c   :  { %v3921_v16 = vpop.eup %3920  ;;  %v2620_v12 = vadd.f32 1.0, %v3919_v14 }
 0xf1d   :  { %v3923_v17 = vpop.eup %3922  ;;  %v2651_v21 = vrot.slane %v3921_v16, %v2650_v9 }
 0xf1e   :  { %v3925_v20 = vpop.eup %3924  ;;  %v2655_v15 = vrot.slane %v3923_v17, %v2650_v9 }
 0xf1f   :  { %v2659_v23 = vrot.slane %v3925_v20, %v2650_v9 }
 0xf20   :  { %v2681_v24 = vsel %vm2680_vm4, %v2655_v15, %v2651_v21 }
 0xf21   :  { %v2683_v25 = vsel %vm2682_vm5, %v2659_v23, %v2681_v24 }
 0xf9b   :  { %v2571_v3 = vpop.xlane.xlu1 %2570 }
 0xf9c   :  { %v2589_v4 = vadd.f32 %v2580_v34, %v2571_v3 }
 0xf9e   :  { %v2747_v5 = vmul.f32 -1.442695, %v2589_v4 }
 0xfa0   :  { %3926 = vpow2.f32 %v2747_v5 }
 0xfa1   :  { %3928 = vrcp.f32 %v2617_v7 }
 0xfa2   :  { %3930 = vrcp.f32 %v2618_v13 }
 0xfa3   :  { %3932 = vrcp.f32 %v2619_v19 }
 0xfa4   :  { %3934 = vrcp.f32 %v2620_v12 }
 0xfaa   :  { %v3927_v18 = vpop.eup %3926 }
 0xfab   :  { %v3929_v26 = vpop.eup %3928  ;;  %v2621_v22 = vadd.f32 1.0, %v3927_v18 }
 0xfac   :  { %v3931_v28 = vpop.eup %3930  ;;  %v2663_v31 = vrot.slane %v3929_v26, %v2650_v9 }
 0xfad   :  { %3936 = vrcp.f32 %v2621_v22  ;;  %v3933_v35 = vpop.eup %3932  ;;  %v2667_v38 = vrot.slane %v3931_v28, %v2650_v9 }
 0xfae   :  { %v2685_v2 = vsel %vm2684_vm6, %v2663_v31, %v2683_v25  ;;  %v3935_v1 = vpop.eup %3934  ;;  %v2671_v44 = vrot.slane %v3933_v35, %v2650_v9 }
 0xfaf   :  { %v2687_v41 = vsel %vm2686_vm7, %v2667_v38, %v2685_v2  ;;  %v2675_v29 = vrot.slane %v3935_v1, %v2650_v9 }
 0xfb0   :  { %v2689_v46 = vsel %vm2688_vm8, %v2671_v44, %v2687_v41 }
 0xfb1   :  { %v2691_v32 = vsel %vm2690_vm9, %v2675_v29, %v2689_v46 }
 0xfb7   :  { %v3937_v27 = vpop.eup %3936 }
 0xfb8   :  { %v2679_v30 = vrot.slane %v3937_v27, %v2650_v9 }
 0xfba   :  { %v2693_v33 = vsel %vm2692_vm10, %v2679_v30, %v2691_v32 }
 0xfbb   :  { %2696 = vst.msk [vmem:[%s4595_s9] sm:$0xff] %vm2695_vm11, %v2693_v33 }
 0xfbc   :  { %2701 = vsyncpa [#allocation7], 1 }
 0xfbd   :  { %2702 = vsyncpa [#allocation9], 1 }
 0xfbe   :  { %2703 = vsyncpa [#allocation12], 1 }

</bundles_post_ra>
